<compile_context>
chip_gen: v7x
topology: tpu7x:2x2x1
jax: 0.10.0
libtpu: 0.0.40
codegen_flags: <defaults>
</compile_context>

<pallas_src>
import functools
import math

import jax
import jax.numpy as jnp
from jax import lax
from jax.experimental import pallas as pl
from jax.experimental.pallas import tpu as pltpu


def _residual_temporal_block_kernel(*refs, seq_len, kernel_size, n_groups, eps,
                                    has_res_conv):
    if has_res_conv:
        (xc_ref, xr_ref, w0_ref, b0_ref, ge_ref, be_ref,
         w1_ref, b1_ref, g1_ref, bt1_ref, m_ref, mt_ref,
         wr_ref, br_ref, o_ref) = refs
    else:
        (xc_ref, xr_ref, w0_ref, b0_ref, ge_ref, be_ref,
         w1_ref, b1_ref, g1_ref, bt1_ref, m_ref, mt_ref, o_ref) = refs

    K = kernel_size
    T = seq_len
    pad = K // 2
    N, C = o_ref.shape                       # N = Bb*T packed rows, C = out_channels
    inv_cg = 1.0 / (C // n_groups)

    m = m_ref[...]                           # (C, G) one-hot, f32
    mt = mt_ref[...]                         # (G, C) one-hot, f32

    def group_norm(acc):
        # Per-(batch, time) position, per-group stats via one-hot matmuls
        # (matches rearrange('b c h -> (b h) c') + nn.GroupNorm).
        # Two-pass mean/var (no E[x^2]-mean^2 cancellation); rsqrt only on (N, G).
        mean_g = jnp.dot(acc, m, preferred_element_type=jnp.float32) * inv_cg
        d = acc - jnp.dot(mean_g, mt, preferred_element_type=jnp.float32)
        var_g = jnp.dot(d * d, m, preferred_element_type=jnp.float32) * inv_cg
        inv_b = jnp.dot(lax.rsqrt(var_g + eps), mt,
                        preferred_element_type=jnp.float32)
        return d * inv_b

    def mish(v):
        # v * tanh(softplus(v)) == v * n/(n+2) with n = e^v (e^v + 2):
        # one EUP exp + one divide.  For v > 20 the ratio is 1.0 to f32 precision.
        e = jnp.exp(jnp.minimum(v, 20.0))
        n = e * (e + 2.0)
        return v * (n / (n + 2.0))

    # ---- block 0: Conv1d as a single (N, K*Cin) x (K*Cin, C) matmul (im2col LHS built
    #      in the wrapper since Cin << 128) -> GroupNorm -> ada (folded affine) -> Mish.
    acc0 = jnp.dot(xc_ref[...], w0_ref[...], preferred_element_type=jnp.float32)
    acc0 = acc0 + b0_ref[...]
    h = group_norm(acc0) * ge_ref[...].astype(jnp.float32) \
        + be_ref[...].astype(jnp.float32)
    h = mish(h)

    # ---- block 1: Conv1d -> GroupNorm -> Mish, intermediate never leaves registers.
    # Build the (N, K*C) im2col of h from K shifted copies (sublane slice + zero fill;
    # boundary mask keeps taps inside each packed length-T sequence), then ONE matmul.
    needs_mask = N != T                       # only when >1 sequence is packed per step
    if needs_mask:
        t_in_seq = lax.broadcasted_iota(jnp.int32, (N, C), 0) % T
    cols = []
    for k in range(K):
        off = k - pad
        if off == 0:
            cols.append(h)
            continue
        if off > 0:
            shifted = jnp.concatenate(
                [h[off:, :], jnp.zeros((off, C), h.dtype)], axis=0)
        else:
            shifted = jnp.concatenate(
                [jnp.zeros((-off, C), h.dtype), h[:off, :]], axis=0)
        if needs_mask:
            valid = (t_in_seq + off >= 0) & (t_in_seq + off < T)
            shifted = jnp.where(valid, shifted, 0.0)
        cols.append(shifted)
    lhs1 = jnp.concatenate(cols, axis=1).astype(w1_ref.dtype)      # (N, K*C)
    acc1 = jnp.dot(lhs1, w1_ref[...], preferred_element_type=jnp.float32)
    acc1 = acc1 + b1_ref[...]
    y = group_norm(acc1) * g1_ref[...] + bt1_ref[...]
    y = mish(y)
    # TODO(synk): nn.Dropout is identity at inference; no dropout mask is applied.

    # ---- residual path: 1x1 conv when Cin != Cout, plain add otherwise (no MXU op,
    #      no weight DMA in the identity case).
    if has_res_conv:
        res = jnp.dot(xr_ref[...], wr_ref[...], preferred_element_type=jnp.float32)
        res = res + br_ref[...]
    else:
        res = xr_ref[...].astype(jnp.float32)

    o_ref[...] = (y + res).astype(o_ref.dtype)


@functools.partial(jax.jit, static_argnames=("kernel_size", "n_groups", "eps"))
def residual_temporal_block(x, time_embeds, params, *,
                            kernel_size=5, n_groups=8, eps=1e-5):
    """Forward pass of ResidualTemporalBlock (adagn=True, eval mode).

    x:           [B, Cin, T]   (PyTorch NCW)
    time_embeds: [B, embed_dim]
    params:
      w0 [Cout, Cin, K], b0/g0/be0 [Cout]          Conv1dAdaGNBlock
      w1 [Cout, Cout, K], b1/g1/be1 [Cout]         Conv1dBlock
      w_mlp [2*Cout, embed_dim], b_mlp [2*Cout]    time_mlp Linear
      wr [Cout, Cin], br [Cout]  (omit / None => identity residual, needs Cin == Cout)
    returns [B, Cout, T]
    """
    B, Cin, T = x.shape
    Cout = params["b0"].shape[0]
    K = kernel_size
    pad = K // 2
    G = n_groups
    dt = x.dtype
    has_res_conv = params.get("wr", None) is not None
    if not has_res_conv and Cin != Cout:
        raise ValueError("identity residual path requires inp_channels == out_channels")

    # ---- time_mlp (tiny; stays in XLA, fused under jit): Mish -> Linear -> chunk.
    te = time_embeds * jnp.tanh(jax.nn.softplus(time_embeds))
    ss = te @ params["w_mlp"].T + params["b_mlp"]               # (B, 2*Cout)
    scale, shift = ss[:, :Cout], ss[:, Cout:]
    # Fold ada (h*(1+scale)+shift) into GroupNorm-0's affine, per (batch, channel):
    ge = params["g0"][None, :] * (1.0 + scale)
    be = params["be0"][None, :] * (1.0 + scale) + shift

    # ---- batch packing: Bb batches per grid step -> (Bb*T, .) MXU tiles.
    # TODO(synk): re-derive the 256-row target against v7x's 64 MiB VMEM (32 MiB scoped)
    # if channel counts grow; at these widths the per-step working set is a few 100 KiB.
    Bb = max(1, min(B, 256 // max(T, 1)))
    while Bb > 1 and -(-B // Bb) < 2:       # keep >= 2 grid steps for v7x's two TCs
        Bb = -(-Bb // 2)
    align = 8 // math.gcd(T, 8)             # block sublane dim (Bb*T) must tile by 8
    Bb = -(-Bb // align) * align
    Bp = -(-B // Bb) * Bb                   # zero-padded batch
    nsteps = Bp // Bb
    rows = Bb * T

    # ---- NCW -> NWC once, pad batch, build block-0 im2col LHS, flatten to (Bp*T, .).
    x_t = jnp.transpose(x, (0, 2, 1))                           # (B, T, Cin)
    if Bp != B:
        x_t = jnp.pad(x_t, ((0, Bp - B), (0, 0), (0, 0)))
        ge = jnp.pad(ge, ((0, Bp - B), (0, 0)))
        be = jnp.pad(be, ((0, Bp - B), (0, 0)))
    x_halo = jnp.pad(x_t, ((0, 0), (pad, pad), (0, 0)))         # (Bp, T+2p, Cin)
    xc = jnp.concatenate([x_halo[:, k:k + T, :] for k in range(K)],
                         axis=-1).reshape(Bp * T, K * Cin).astype(dt)
    xr = x_t.reshape(Bp * T, Cin).astype(dt)
    ge_pos = jnp.broadcast_to(ge[:, None, :], (Bp, T, Cout)).reshape(Bp * T, Cout)
    be_pos = jnp.broadcast_to(be[:, None, :], (Bp, T, Cout)).reshape(Bp * T, Cout)
    ge_pos = ge_pos.astype(dt)
    be_pos = be_pos.astype(dt)

    # ---- weights in kernel-friendly layouts (native-dtype MXU operands; f32 for the
    #      small per-channel vectors that add straight into f32 accumulators).
    w0 = jnp.transpose(params["w0"], (2, 1, 0)).reshape(K * Cin, Cout).astype(dt)
    w1 = jnp.transpose(params["w1"], (2, 1, 0)).reshape(K * Cout, Cout).astype(dt)
    b0 = params["b0"].reshape(1, Cout).astype(jnp.float32)
    b1 = params["b1"].reshape(1, Cout).astype(jnp.float32)
    g1 = params["g1"].reshape(1, Cout).astype(jnp.float32)
    bt1 = params["be1"].reshape(1, Cout).astype(jnp.float32)

    # group-membership one-hots (grid-invariant inputs; constant index_map).
    cg = Cout // G
    M = (jnp.arange(Cout)[:, None] // cg ==
         jnp.arange(G)[None, :]).astype(jnp.float32)             # (Cout, G)
    MT = M.T                                                     # (G, Cout)

    const = lambda b: (0, 0)
    blocked = lambda width: pl.BlockSpec((rows, width), lambda b: (b, 0))

    in_specs = [
        blocked(K * Cin),                        # xc  (im2col LHS, block-0 conv)
        blocked(Cin),                            # xr  (residual path input)
        pl.BlockSpec((K * Cin, Cout), const),    # w0
        pl.BlockSpec((1, Cout), const),          # b0
        blocked(Cout),                           # gamma_eff (ada folded), per position
        blocked(Cout),                           # beta_eff  (ada folded), per position
        pl.BlockSpec((K * Cout, Cout), const),   # w1 (im2col layout)
        pl.BlockSpec((1, Cout), const),          # b1
        pl.BlockSpec((1, Cout), const),          # g1
        pl.BlockSpec((1, Cout), const),          # be1
        pl.BlockSpec((Cout, G), const),          # M
        pl.BlockSpec((G, Cout), const),          # MT
    ]
    operands = [xc, xr, w0, b0, ge_pos, be_pos, w1, b1, g1, bt1, M, MT]
    if has_res_conv:
        wr = jnp.transpose(params["wr"], (1, 0)).astype(dt)      # (Cin, Cout)
        br = params["br"].reshape(1, Cout).astype(jnp.float32)
        in_specs += [pl.BlockSpec((Cin, Cout), const),
                     pl.BlockSpec((1, Cout), const)]
        operands += [wr, br]

    kernel = functools.partial(
        _residual_temporal_block_kernel, seq_len=T, kernel_size=K,
        n_groups=G, eps=eps, has_res_conv=has_res_conv)

    out_flat = pl.pallas_call(
        kernel,
        out_shape=jax.ShapeDtypeStruct((Bp * T, Cout), dt),
        grid_spec=pltpu.PrefetchScalarGridSpec(
            num_scalar_prefetch=0,
            grid=(nsteps,),
            in_specs=in_specs,
            out_specs=pl.BlockSpec((rows, Cout), lambda b: (b, 0)),
        ),
        compiler_params=pltpu.CompilerParams(
            dimension_semantics=("parallel",)),
    )(*operands)

    out = out_flat.reshape(Bp, T, Cout)[:B]
    # NCW to match the PyTorch module; drop this transpose if the consumer accepts NWC.
    return jnp.transpose(out, (0, 2, 1))


def _reference(x, time_embeds, params, *, kernel_size=5, n_groups=8, eps=1e-5):
    """Pure-JAX reference mirroring the PyTorch ResidualTemporalBlock forward (eval)."""
    K = kernel_size
    Cout = params["b0"].shape[0]

    def mish(v):
        return v * jnp.tanh(jax.nn.softplus(v))

    def conv1d(v, w, b):
        y = lax.conv_general_dilated(
            v, w, window_strides=(1,), padding=[(K // 2, K // 2)],
            dimension_numbers=("NCH", "OIH", "NCH"))
        return y + b[None, :, None]

    def group_norm_per_pos(v, gamma, beta):
        B, C, T = v.shape
        vt = jnp.transpose(v, (0, 2, 1)).reshape(B * T, n_groups, C // n_groups)
        mean = vt.mean(-1, keepdims=True)
        var = ((vt - mean) ** 2).mean(-1, keepdims=True)
        vn = (vt - mean) / jnp.sqrt(var + eps)
        vn = vn.reshape(B * T, C) * gamma[None, :] + beta[None, :]
        return jnp.transpose(vn.reshape(B, T, C), (0, 2, 1))

    te = mish(time_embeds)
    ss = te @ params["w_mlp"].T + params["b_mlp"]
    scale = ss[:, :Cout][:, :, None]
    shift = ss[:, Cout:][:, :, None]

    h = conv1d(x, params["w0"], params["b0"])
    h = group_norm_per_pos(h, params["g0"], params["be0"])
    h = h * (1.0 + scale) + shift
    h = mish(h)

    y = conv1d(h, params["w1"], params["b1"])
    y = group_norm_per_pos(y, params["g1"], params["be1"])
    y = mish(y)

    if params.get("wr", None) is None:
        res = x
    else:
        res = jnp.einsum("bct,oc->bot", x, params["wr"]) + params["br"][None, :, None]
    return y + res


if __name__ == "__main__":
    def make_params(key, Cin, Cout, K, E, with_res):
        ks = jax.random.split(key, 12)
        f32 = jnp.float32
        p = dict(
            w0=jax.random.normal(ks[0], (Cout, Cin, K), f32) * 0.3,
            b0=jax.random.normal(ks[1], (Cout,), f32) * 0.1,
            g0=1.0 + 0.1 * jax.random.normal(ks[2], (Cout,), f32),
            be0=0.1 * jax.random.normal(ks[3], (Cout,), f32),
            w1=jax.random.normal(ks[4], (Cout, Cout, K), f32) * 0.2,
            b1=jax.random.normal(ks[5], (Cout,), f32) * 0.1,
            g1=1.0 + 0.1 * jax.random.normal(ks[6], (Cout,), f32),
            be1=0.1 * jax.random.normal(ks[7], (Cout,), f32),
            w_mlp=jax.random.normal(ks[8], (2 * Cout, E), f32) * 0.2,
            b_mlp=0.1 * jax.random.normal(ks[9], (2 * Cout,), f32),
        )
        if with_res:
            p["wr"] = jax.random.normal(ks[10], (Cout, Cin), f32) * 0.3
            p["br"] = 0.1 * jax.random.normal(ks[11], (Cout,), f32)
        return p

    key = jax.random.PRNGKey(0)
    k1, k2, k3, k4, k5, k6 = jax.random.split(key, 6)

    # Case 1: Cin != Cout -> 1x1 residual conv; B=4 so 2 sequences get packed per grid
    # step (exercises the per-sequence boundary masking of the block-1 conv).
    B, Cin, Cout, T, K, G, E = 4, 4, 32, 16, 5, 8, 32
    x = jax.random.normal(k1, (B, Cin, T), jnp.float32)
    t_emb = jax.random.normal(k2, (B, E), jnp.float32)
    params = make_params(k3, Cin, Cout, K, E, with_res=True)
    out = jax.block_until_ready(
        residual_temporal_block(x, t_emb, params, kernel_size=K, n_groups=G))
    ref = _reference(x, t_emb, params, kernel_size=K, n_groups=G)
    assert out.shape == (B, Cout, T), out.shape
    err = float(jnp.max(jnp.abs(out - ref)))
    assert jnp.allclose(out, ref, rtol=1e-4, atol=1e-4), f"max abs err {err}"

    # Case 2: Cin == Cout -> identity residual path (no 1x1-conv matmul / weight DMA).
    x2 = jax.random.normal(k4, (2, Cout, T), jnp.float32)
    t_emb2 = jax.random.normal(k5, (2, E), jnp.float32)
    params2 = make_params(k6, Cout, Cout, K, E, with_res=False)
    out2 = jax.block_until_ready(
        residual_temporal_block(x2, t_emb2, params2, kernel_size=K, n_groups=G))
    ref2 = _reference(x2, t_emb2, params2, kernel_size=K, n_groups=G)
    err2 = float(jnp.max(jnp.abs(out2 - ref2)))
    assert jnp.allclose(out2, ref2, rtol=1e-4, atol=1e-4), f"max abs err {err2}"

    print("KERNEL_OK")
</pallas_src>

<mosaic_0001>
module attributes {stable_mosaic.version = 11 : i64} {
  func.func @_residual_temporal_block_kernel(%arg0: i32, %arg1: memref<32x20xf32, #tpu.memory_space<vmem>>, %arg2: memref<32x4xf32, #tpu.memory_space<vmem>>, %arg3: memref<20x32xf32, #tpu.memory_space<vmem>>, %arg4: memref<1x32xf32, #tpu.memory_space<vmem>>, %arg5: memref<32x32xf32, #tpu.memory_space<vmem>>, %arg6: memref<32x32xf32, #tpu.memory_space<vmem>>, %arg7: memref<160x32xf32, #tpu.memory_space<vmem>>, %arg8: memref<1x32xf32, #tpu.memory_space<vmem>>, %arg9: memref<1x32xf32, #tpu.memory_space<vmem>>, %arg10: memref<1x32xf32, #tpu.memory_space<vmem>>, %arg11: memref<32x8xf32, #tpu.memory_space<vmem>>, %arg12: memref<8x32xf32, #tpu.memory_space<vmem>>, %arg13: memref<4x32xf32, #tpu.memory_space<vmem>>, %arg14: memref<1x32xf32, #tpu.memory_space<vmem>>, %arg15: memref<32x32xf32, #tpu.memory_space<vmem>>) attributes {dimension_semantics = [#tpu.dimension_semantics<parallel>], iteration_bounds = array<i64: 2>, scalar_prefetch = 0 : i64, scratch_operands = 0 : i64, tpu.core_type = #tpu.core_type<tc>, window_params = [{transform_indices = @transform_0, window_bounds = array<i64: 32, 20>}, {transform_indices = @transform_1, window_bounds = array<i64: 32, 4>}, {pipeline_mode = #tpu.pipeline_mode<synchronous>, transform_indices = @transform_2, window_bounds = array<i64: 20, 32>}, {pipeline_mode = #tpu.pipeline_mode<synchronous>, transform_indices = @transform_3, window_bounds = array<i64: 1, 32>}, {transform_indices = @transform_4, window_bounds = array<i64: 32, 32>}, {transform_indices = @transform_5, window_bounds = array<i64: 32, 32>}, {pipeline_mode = #tpu.pipeline_mode<synchronous>, transform_indices = @transform_6, window_bounds = array<i64: 160, 32>}, {pipeline_mode = #tpu.pipeline_mode<synchronous>, transform_indices = @transform_7, window_bounds = array<i64: 1, 32>}, {pipeline_mode = #tpu.pipeline_mode<synchronous>, transform_indices = @transform_8, window_bounds = array<i64: 1, 32>}, {pipeline_mode = #tpu.pipeline_mode<synchronous>, transform_indices = @transform_9, window_bounds = array<i64: 1, 32>}, {pipeline_mode = #tpu.pipeline_mode<synchronous>, transform_indices = @transform_10, window_bounds = array<i64: 32, 8>}, {pipeline_mode = #tpu.pipeline_mode<synchronous>, transform_indices = @transform_11, window_bounds = array<i64: 8, 32>}, {pipeline_mode = #tpu.pipeline_mode<synchronous>, transform_indices = @transform_12, window_bounds = array<i64: 4, 32>}, {pipeline_mode = #tpu.pipeline_mode<synchronous>, transform_indices = @transform_13, window_bounds = array<i64: 1, 32>}, {transform_indices = @transform_14, window_bounds = array<i64: 32, 32>}]} {
    %c0 = arith.constant 0 : index
    %c0_0 = arith.constant 0 : index
    %0 = vector.load %arg11[%c0, %c0_0] : memref<32x8xf32, #tpu.memory_space<vmem>>, vector<32x8xf32>
    %c0_1 = arith.constant 0 : index
    %c0_2 = arith.constant 0 : index
    %1 = vector.load %arg12[%c0_1, %c0_2] : memref<8x32xf32, #tpu.memory_space<vmem>>, vector<8x32xf32>
    %c0_3 = arith.constant 0 : index
    %c0_4 = arith.constant 0 : index
    %2 = vector.load %arg1[%c0_3, %c0_4] : memref<32x20xf32, #tpu.memory_space<vmem>>, vector<32x20xf32>
    %c0_5 = arith.constant 0 : index
    %c0_6 = arith.constant 0 : index
    %3 = vector.load %arg3[%c0_5, %c0_6] : memref<20x32xf32, #tpu.memory_space<vmem>>, vector<20x32xf32>
    %cst = arith.constant dense<0.000000e+00> : vector<32x32xf32>
    %4 = tpu.matmul %2, %3, %cst {dimension_numbers = #tpu.dot_dimension_numbers<[1], [0], [0], [1], [0, 0, 1, 1], [], []>} : vector<32x20xf32>, vector<20x32xf32>, vector<32x32xf32> -> vector<32x32xf32>
    %c0_7 = arith.constant 0 : index
    %c0_8 = arith.constant 0 : index
    %5 = vector.load %arg4[%c0_7, %c0_8] : memref<1x32xf32, #tpu.memory_space<vmem>>, vector<1x32xf32>
    %6 = vector.broadcast %5 : vector<1x32xf32> to vector<32x32xf32>
    %7 = arith.addf %4, %6 : vector<32x32xf32>
    %cst_9 = arith.constant dense<0.000000e+00> : vector<32x8xf32>
    %8 = tpu.matmul %7, %0, %cst_9 {dimension_numbers = #tpu.dot_dimension_numbers<[1], [0], [0], [1], [0, 0, 1, 1], [], []>} : vector<32x32xf32>, vector<32x8xf32>, vector<32x8xf32> -> vector<32x8xf32>
    %cst_10 = arith.constant 2.500000e-01 : f32
    %9 = vector.broadcast %cst_10 : f32 to vector<32x8xf32>
    %10 = arith.mulf %8, %9 : vector<32x8xf32>
    %cst_11 = arith.constant dense<0.000000e+00> : vector<32x32xf32>
    %11 = tpu.matmul %10, %1, %cst_11 {dimension_numbers = #tpu.dot_dimension_numbers<[1], [0], [0], [1], [0, 0, 1, 1], [], []>} : vector<32x8xf32>, vector<8x32xf32>, vector<32x32xf32> -> vector<32x32xf32>
    %12 = arith.subf %7, %11 : vector<32x32xf32>
    %13 = arith.mulf %12, %12 : vector<32x32xf32>
    %cst_12 = arith.constant dense<0.000000e+00> : vector<32x8xf32>
    %14 = tpu.matmul %13, %0, %cst_12 {dimension_numbers = #tpu.dot_dimension_numbers<[1], [0], [0], [1], [0, 0, 1, 1], [], []>} : vector<32x32xf32>, vector<32x8xf32>, vector<32x8xf32> -> vector<32x8xf32>
    %cst_13 = arith.constant 2.500000e-01 : f32
    %15 = vector.broadcast %cst_13 : f32 to vector<32x8xf32>
    %16 = arith.mulf %14, %15 : vector<32x8xf32>
    %cst_14 = arith.constant 9.99999974E-6 : f32
    %17 = vector.broadcast %cst_14 : f32 to vector<32x8xf32>
    %18 = arith.addf %16, %17 : vector<32x8xf32>
    %19 = math.rsqrt %18 : vector<32x8xf32>
    %cst_15 = arith.constant dense<0.000000e+00> : vector<32x32xf32>
    %20 = tpu.matmul %19, %1, %cst_15 {dimension_numbers = #tpu.dot_dimension_numbers<[1], [0], [0], [1], [0, 0, 1, 1], [], []>} : vector<32x8xf32>, vector<8x32xf32>, vector<32x32xf32> -> vector<32x32xf32>
    %21 = arith.mulf %12, %20 : vector<32x32xf32>
    %c0_16 = arith.constant 0 : index
    %c0_17 = arith.constant 0 : index
    %22 = vector.load %arg5[%c0_16, %c0_17] : memref<32x32xf32, #tpu.memory_space<vmem>>, vector<32x32xf32>
    %23 = arith.mulf %21, %22 : vector<32x32xf32>
    %c0_18 = arith.constant 0 : index
    %c0_19 = arith.constant 0 : index
    %24 = vector.load %arg6[%c0_18, %c0_19] : memref<32x32xf32, #tpu.memory_space<vmem>>, vector<32x32xf32>
    %25 = arith.addf %23, %24 : vector<32x32xf32>
    %cst_20 = arith.constant 2.000000e+01 : f32
    %26 = vector.broadcast %cst_20 : f32 to vector<32x32xf32>
    %27 = arith.minimumf %25, %26 : vector<32x32xf32>
    %28 = math.exp %27 : vector<32x32xf32>
    %cst_21 = arith.constant 2.000000e+00 : f32
    %29 = vector.broadcast %cst_21 : f32 to vector<32x32xf32>
    %30 = arith.addf %28, %29 : vector<32x32xf32>
    %31 = arith.mulf %28, %30 : vector<32x32xf32>
    %cst_22 = arith.constant 2.000000e+00 : f32
    %32 = vector.broadcast %cst_22 : f32 to vector<32x32xf32>
    %33 = arith.addf %31, %32 : vector<32x32xf32>
    %34 = arith.divf %31, %33 : vector<32x32xf32>
    %35 = arith.mulf %25, %34 : vector<32x32xf32>
    %36 = tpu.iota {dimensions = array<i32: 0>} : vector<32x32xi32>
    %c16_i32 = arith.constant 16 : i32
    %c0_i32 = arith.constant 0 : i32
    %37 = arith.cmpi eq, %c16_i32, %c0_i32 : i32
    %c1_i32 = arith.constant 1 : i32
    %38 = arith.select %37, %c1_i32, %c16_i32 : i32
    %39 = vector.broadcast %38 : i32 to vector<32x32xi32>
    %40 = arith.remsi %36, %39 : vector<32x32xi32>
    %c0_i32_23 = arith.constant 0 : i32
    %41 = vector.broadcast %c0_i32_23 : i32 to vector<32x32xi32>
    %42 = arith.cmpi ne, %40, %41 : vector<32x32xi32>
    %c0_i32_24 = arith.constant 0 : i32
    %43 = vector.broadcast %c0_i32_24 : i32 to vector<32x32xi32>
    %44 = arith.cmpi slt, %40, %43 : vector<32x32xi32>
    %c0_i32_25 = arith.constant 0 : i32
    %45 = arith.cmpi slt, %38, %c0_i32_25 : i32
    %46 = vector.broadcast %45 : i1 to vector<32x32xi1>
    %47 = vector.broadcast %46 : vector<32x32xi1> to vector<32x32xi1>
    %48 = arith.xori %44, %47 : vector<32x32xi1>
    %49 = arith.andi %48, %42 : vector<32x32xi1>
    %50 = vector.broadcast %38 : i32 to vector<32x32xi32>
    %51 = arith.addi %40, %50 : vector<32x32xi32>
    %52 = arith.select %49, %51, %40 : vector<32x32xi1>, vector<32x32xi32>
    %cst_26 = arith.constant 0.000000e+00 : f32
    %53 = vector.broadcast %cst_26 : f32 to vector<2x32xf32>
    %54 = vector.extract_strided_slice %35 {offsets = [0, 0], sizes = [30, 32], strides = [1, 1]} : vector<32x32xf32> to vector<30x32xf32>
    %55 = tpu.concatenate %53, %54 in 0 : vector<2x32xf32>, vector<30x32xf32> -> vector<32x32xf32>
    %c-2_i32 = arith.constant -2 : i32
    %56 = vector.broadcast %c-2_i32 : i32 to vector<32x32xi32>
    %57 = arith.addi %52, %56 : vector<32x32xi32>
    %c0_i32_27 = arith.constant 0 : i32
    %58 = vector.broadcast %c0_i32_27 : i32 to vector<32x32xi32>
    %59 = arith.cmpi sge, %57, %58 : vector<32x32xi32>
    %c-2_i32_28 = arith.constant -2 : i32
    %60 = vector.broadcast %c-2_i32_28 : i32 to vector<32x32xi32>
    %61 = arith.addi %52, %60 : vector<32x32xi32>
    %c16_i32_29 = arith.constant 16 : i32
    %62 = vector.broadcast %c16_i32_29 : i32 to vector<32x32xi32>
    %63 = arith.cmpi slt, %61, %62 : vector<32x32xi32>
    %64 = arith.andi %59, %63 : vector<32x32xi1>
    %cst_30 = arith.constant 0.000000e+00 : f32
    %65 = vector.broadcast %cst_30 : f32 to vector<32x32xf32>
    %66 = arith.select %64, %55, %65 : vector<32x32xi1>, vector<32x32xf32>
    %cst_31 = arith.constant 0.000000e+00 : f32
    %67 = vector.broadcast %cst_31 : f32 to vector<1x32xf32>
    %68 = vector.extract_strided_slice %35 {offsets = [0, 0], sizes = [31, 32], strides = [1, 1]} : vector<32x32xf32> to vector<31x32xf32>
    %69 = tpu.concatenate %67, %68 in 0 : vector<1x32xf32>, vector<31x32xf32> -> vector<32x32xf32>
    %c-1_i32 = arith.constant -1 : i32
    %70 = vector.broadcast %c-1_i32 : i32 to vector<32x32xi32>
    %71 = arith.addi %52, %70 : vector<32x32xi32>
    %c0_i32_32 = arith.constant 0 : i32
    %72 = vector.broadcast %c0_i32_32 : i32 to vector<32x32xi32>
    %73 = arith.cmpi sge, %71, %72 : vector<32x32xi32>
    %c-1_i32_33 = arith.constant -1 : i32
    %74 = vector.broadcast %c-1_i32_33 : i32 to vector<32x32xi32>
    %75 = arith.addi %52, %74 : vector<32x32xi32>
    %c16_i32_34 = arith.constant 16 : i32
    %76 = vector.broadcast %c16_i32_34 : i32 to vector<32x32xi32>
    %77 = arith.cmpi slt, %75, %76 : vector<32x32xi32>
    %78 = arith.andi %73, %77 : vector<32x32xi1>
    %cst_35 = arith.constant 0.000000e+00 : f32
    %79 = vector.broadcast %cst_35 : f32 to vector<32x32xf32>
    %80 = arith.select %78, %69, %79 : vector<32x32xi1>, vector<32x32xf32>
    %81 = vector.extract_strided_slice %35 {offsets = [1, 0], sizes = [31, 32], strides = [1, 1]} : vector<32x32xf32> to vector<31x32xf32>
    %cst_36 = arith.constant 0.000000e+00 : f32
    %82 = vector.broadcast %cst_36 : f32 to vector<1x32xf32>
    %83 = tpu.concatenate %81, %82 in 0 : vector<31x32xf32>, vector<1x32xf32> -> vector<32x32xf32>
    %c1_i32_37 = arith.constant 1 : i32
    %84 = vector.broadcast %c1_i32_37 : i32 to vector<32x32xi32>
    %85 = arith.addi %52, %84 : vector<32x32xi32>
    %c0_i32_38 = arith.constant 0 : i32
    %86 = vector.broadcast %c0_i32_38 : i32 to vector<32x32xi32>
    %87 = arith.cmpi sge, %85, %86 : vector<32x32xi32>
    %c1_i32_39 = arith.constant 1 : i32
    %88 = vector.broadcast %c1_i32_39 : i32 to vector<32x32xi32>
    %89 = arith.addi %52, %88 : vector<32x32xi32>
    %c16_i32_40 = arith.constant 16 : i32
    %90 = vector.broadcast %c16_i32_40 : i32 to vector<32x32xi32>
    %91 = arith.cmpi slt, %89, %90 : vector<32x32xi32>
    %92 = arith.andi %87, %91 : vector<32x32xi1>
    %cst_41 = arith.constant 0.000000e+00 : f32
    %93 = vector.broadcast %cst_41 : f32 to vector<32x32xf32>
    %94 = arith.select %92, %83, %93 : vector<32x32xi1>, vector<32x32xf32>
    %95 = vector.extract_strided_slice %35 {offsets = [2, 0], sizes = [30, 32], strides = [1, 1]} : vector<32x32xf32> to vector<30x32xf32>
    %cst_42 = arith.constant 0.000000e+00 : f32
    %96 = vector.broadcast %cst_42 : f32 to vector<2x32xf32>
    %97 = tpu.concatenate %95, %96 in 0 : vector<30x32xf32>, vector<2x32xf32> -> vector<32x32xf32>
    %c2_i32 = arith.constant 2 : i32
    %98 = vector.broadcast %c2_i32 : i32 to vector<32x32xi32>
    %99 = arith.addi %52, %98 : vector<32x32xi32>
    %c0_i32_43 = arith.constant 0 : i32
    %100 = vector.broadcast %c0_i32_43 : i32 to vector<32x32xi32>
    %101 = arith.cmpi sge, %99, %100 : vector<32x32xi32>
    %c2_i32_44 = arith.constant 2 : i32
    %102 = vector.broadcast %c2_i32_44 : i32 to vector<32x32xi32>
    %103 = arith.addi %52, %102 : vector<32x32xi32>
    %c16_i32_45 = arith.constant 16 : i32
    %104 = vector.broadcast %c16_i32_45 : i32 to vector<32x32xi32>
    %105 = arith.cmpi slt, %103, %104 : vector<32x32xi32>
    %106 = arith.andi %101, %105 : vector<32x32xi1>
    %cst_46 = arith.constant 0.000000e+00 : f32
    %107 = vector.broadcast %cst_46 : f32 to vector<32x32xf32>
    %108 = arith.select %106, %97, %107 : vector<32x32xi1>, vector<32x32xf32>
    %109 = tpu.concatenate %66, %80, %35, %94, %108 in 1 : vector<32x32xf32>, vector<32x32xf32>, vector<32x32xf32>, vector<32x32xf32>, vector<32x32xf32> -> vector<32x160xf32>
    %c0_47 = arith.constant 0 : index
    %c0_48 = arith.constant 0 : index
    %110 = vector.load %arg7[%c0_47, %c0_48] : memref<160x32xf32, #tpu.memory_space<vmem>>, vector<160x32xf32>
    %cst_49 = arith.constant dense<0.000000e+00> : vector<32x32xf32>
    %111 = tpu.matmul %109, %110, %cst_49 {dimension_numbers = #tpu.dot_dimension_numbers<[1], [0], [0], [1], [0, 0, 1, 1], [], []>} : vector<32x160xf32>, vector<160x32xf32>, vector<32x32xf32> -> vector<32x32xf32>
    %c0_50 = arith.constant 0 : index
    %c0_51 = arith.constant 0 : index
    %112 = vector.load %arg8[%c0_50, %c0_51] : memref<1x32xf32, #tpu.memory_space<vmem>>, vector<1x32xf32>
    %113 = vector.broadcast %112 : vector<1x32xf32> to vector<32x32xf32>
    %114 = arith.addf %111, %113 : vector<32x32xf32>
    %cst_52 = arith.constant dense<0.000000e+00> : vector<32x8xf32>
    %115 = tpu.matmul %114, %0, %cst_52 {dimension_numbers = #tpu.dot_dimension_numbers<[1], [0], [0], [1], [0, 0, 1, 1], [], []>} : vector<32x32xf32>, vector<32x8xf32>, vector<32x8xf32> -> vector<32x8xf32>
    %cst_53 = arith.constant 2.500000e-01 : f32
    %116 = vector.broadcast %cst_53 : f32 to vector<32x8xf32>
    %117 = arith.mulf %115, %116 : vector<32x8xf32>
    %cst_54 = arith.constant dense<0.000000e+00> : vector<32x32xf32>
    %118 = tpu.matmul %117, %1, %cst_54 {dimension_numbers = #tpu.dot_dimension_numbers<[1], [0], [0], [1], [0, 0, 1, 1], [], []>} : vector<32x8xf32>, vector<8x32xf32>, vector<32x32xf32> -> vector<32x32xf32>
    %119 = arith.subf %114, %118 : vector<32x32xf32>
    %120 = arith.mulf %119, %119 : vector<32x32xf32>
    %cst_55 = arith.constant dense<0.000000e+00> : vector<32x8xf32>
    %121 = tpu.matmul %120, %0, %cst_55 {dimension_numbers = #tpu.dot_dimension_numbers<[1], [0], [0], [1], [0, 0, 1, 1], [], []>} : vector<32x32xf32>, vector<32x8xf32>, vector<32x8xf32> -> vector<32x8xf32>
    %cst_56 = arith.constant 2.500000e-01 : f32
    %122 = vector.broadcast %cst_56 : f32 to vector<32x8xf32>
    %123 = arith.mulf %121, %122 : vector<32x8xf32>
    %cst_57 = arith.constant 9.99999974E-6 : f32
    %124 = vector.broadcast %cst_57 : f32 to vector<32x8xf32>
    %125 = arith.addf %123, %124 : vector<32x8xf32>
    %126 = math.rsqrt %125 : vector<32x8xf32>
    %cst_58 = arith.constant dense<0.000000e+00> : vector<32x32xf32>
    %127 = tpu.matmul %126, %1, %cst_58 {dimension_numbers = #tpu.dot_dimension_numbers<[1], [0], [0], [1], [0, 0, 1, 1], [], []>} : vector<32x8xf32>, vector<8x32xf32>, vector<32x32xf32> -> vector<32x32xf32>
    %128 = arith.mulf %119, %127 : vector<32x32xf32>
    %c0_59 = arith.constant 0 : index
    %c0_60 = arith.constant 0 : index
    %129 = vector.load %arg9[%c0_59, %c0_60] : memref<1x32xf32, #tpu.memory_space<vmem>>, vector<1x32xf32>
    %130 = vector.broadcast %129 : vector<1x32xf32> to vector<32x32xf32>
    %131 = arith.mulf %128, %130 : vector<32x32xf32>
    %c0_61 = arith.constant 0 : index
    %c0_62 = arith.constant 0 : index
    %132 = vector.load %arg10[%c0_61, %c0_62] : memref<1x32xf32, #tpu.memory_space<vmem>>, vector<1x32xf32>
    %133 = vector.broadcast %132 : vector<1x32xf32> to vector<32x32xf32>
    %134 = arith.addf %131, %133 : vector<32x32xf32>
    %cst_63 = arith.constant 2.000000e+01 : f32
    %135 = vector.broadcast %cst_63 : f32 to vector<32x32xf32>
    %136 = arith.minimumf %134, %135 : vector<32x32xf32>
    %137 = math.exp %136 : vector<32x32xf32>
    %cst_64 = arith.constant 2.000000e+00 : f32
    %138 = vector.broadcast %cst_64 : f32 to vector<32x32xf32>
    %139 = arith.addf %137, %138 : vector<32x32xf32>
    %140 = arith.mulf %137, %139 : vector<32x32xf32>
    %cst_65 = arith.constant 2.000000e+00 : f32
    %141 = vector.broadcast %cst_65 : f32 to vector<32x32xf32>
    %142 = arith.addf %140, %141 : vector<32x32xf32>
    %143 = arith.divf %140, %142 : vector<32x32xf32>
    %144 = arith.mulf %134, %143 : vector<32x32xf32>
    %c0_66 = arith.constant 0 : index
    %c0_67 = arith.constant 0 : index
    %145 = vector.load %arg2[%c0_66, %c0_67] : memref<32x4xf32, #tpu.memory_space<vmem>>, vector<32x4xf32>
    %c0_68 = arith.constant 0 : index
    %c0_69 = arith.constant 0 : index
    %146 = vector.load %arg13[%c0_68, %c0_69] : memref<4x32xf32, #tpu.memory_space<vmem>>, vector<4x32xf32>
    %cst_70 = arith.constant dense<0.000000e+00> : vector<32x32xf32>
    %147 = tpu.matmul %145, %146, %cst_70 {dimension_numbers = #tpu.dot_dimension_numbers<[1], [0], [0], [1], [0, 0, 1, 1], [], []>} : vector<32x4xf32>, vector<4x32xf32>, vector<32x32xf32> -> vector<32x32xf32>
    %c0_71 = arith.constant 0 : index
    %c0_72 = arith.constant 0 : index
    %148 = vector.load %arg14[%c0_71, %c0_72] : memref<1x32xf32, #tpu.memory_space<vmem>>, vector<1x32xf32>
    %149 = vector.broadcast %148 : vector<1x32xf32> to vector<32x32xf32>
    %150 = arith.addf %147, %149 : vector<32x32xf32>
    %151 = arith.addf %144, %150 : vector<32x32xf32>
    %c0_73 = arith.constant 0 : index
    %c0_74 = arith.constant 0 : index
    %152 = vector.load %arg15[%c0_73, %c0_74] : memref<32x32xf32, #tpu.memory_space<vmem>>, vector<32x32xf32>
    tpu.vector_store %arg15[%c0_73, %c0_74], %151 {strides = array<i32>} : memref<32x32xf32, #tpu.memory_space<vmem>>, vector<32x32xf32>,
    return
  }
  func.func @transform_0(%arg0: i32) -> (i32, i32) {
    %c0_i32 = arith.constant 0 : i32
    %c0_i32_0 = arith.constant 0 : i32
    return %arg0, %c0_i32 : i32, i32
  }
  func.func @transform_1(%arg0: i32) -> (i32, i32) {
    %c0_i32 = arith.constant 0 : i32
    %c0_i32_0 = arith.constant 0 : i32
    return %arg0, %c0_i32 : i32, i32
  }
  func.func @transform_2(%arg0: i32) -> (i32, i32) {
    %c0_i32 = arith.constant 0 : i32
    %c0_i32_0 = arith.constant 0 : i32
    %c0_i32_1 = arith.constant 0 : i32
    return %c0_i32, %c0_i32_0 : i32, i32
  }
  func.func @transform_3(%arg0: i32) -> (i32, i32) {
    %c0_i32 = arith.constant 0 : i32
    %c0_i32_0 = arith.constant 0 : i32
    %c0_i32_1 = arith.constant 0 : i32
    return %c0_i32, %c0_i32_0 : i32, i32
  }
  func.func @transform_4(%arg0: i32) -> (i32, i32) {
    %c0_i32 = arith.constant 0 : i32
    %c0_i32_0 = arith.constant 0 : i32
    return %arg0, %c0_i32 : i32, i32
  }
  func.func @transform_5(%arg0: i32) -> (i32, i32) {
    %c0_i32 = arith.constant 0 : i32
    %c0_i32_0 = arith.constant 0 : i32
    return %arg0, %c0_i32 : i32, i32
  }
  func.func @transform_6(%arg0: i32) -> (i32, i32) {
    %c0_i32 = arith.constant 0 : i32
    %c0_i32_0 = arith.constant 0 : i32
    %c0_i32_1 = arith.constant 0 : i32
    return %c0_i32, %c0_i32_0 : i32, i32
  }
  func.func @transform_7(%arg0: i32) -> (i32, i32) {
    %c0_i32 = arith.constant 0 : i32
    %c0_i32_0 = arith.constant 0 : i32
    %c0_i32_1 = arith.constant 0 : i32
    return %c0_i32, %c0_i32_0 : i32, i32
  }
  func.func @transform_8(%arg0: i32) -> (i32, i32) {
    %c0_i32 = arith.constant 0 : i32
    %c0_i32_0 = arith.constant 0 : i32
    %c0_i32_1 = arith.constant 0 : i32
    return %c0_i32, %c0_i32_0 : i32, i32
  }
  func.func @transform_9(%arg0: i32) -> (i32, i32) {
    %c0_i32 = arith.constant 0 : i32
    %c0_i32_0 = arith.constant 0 : i32
    %c0_i32_1 = arith.constant 0 : i32
    return %c0_i32, %c0_i32_0 : i32, i32
  }
  func.func @transform_10(%arg0: i32) -> (i32, i32) {
    %c0_i32 = arith.constant 0 : i32
    %c0_i32_0 = arith.constant 0 : i32
    %c0_i32_1 = arith.constant 0 : i32
    return %c0_i32, %c0_i32_0 : i32, i32
  }
  func.func @transform_11(%arg0: i32) -> (i32, i32) {
    %c0_i32 = arith.constant 0 : i32
    %c0_i32_0 = arith.constant 0 : i32
    %c0_i32_1 = arith.constant 0 : i32
    return %c0_i32, %c0_i32_0 : i32, i32
  }
  func.func @transform_12(%arg0: i32) -> (i32, i32) {
    %c0_i32 = arith.constant 0 : i32
    %c0_i32_0 = arith.constant 0 : i32
    %c0_i32_1 = arith.constant 0 : i32
    return %c0_i32, %c0_i32_0 : i32, i32
  }
  func.func @transform_13(%arg0: i32) -> (i32, i32) {
    %c0_i32 = arith.constant 0 : i32
    %c0_i32_0 = arith.constant 0 : i32
    %c0_i32_1 = arith.constant 0 : i32
    return %c0_i32, %c0_i32_0 : i32, i32
  }
  func.func @transform_14(%arg0: i32) -> (i32, i32) {
    %c0_i32 = arith.constant 0 : i32
    %c0_i32_0 = arith.constant 0 : i32
    return %arg0, %c0_i32 : i32, i32
  }
}

</mosaic_0001>

<bundles_post_ra>
// kernel: residual_temporal_block.1
= control target key start
LH: loop header
LB: loop body
LE: loop exit
PB: predicated region body
PF: predicated region fallthrough
CT: control target
= control target key end

     0   :  { %19 = vsyncpa [#allocation3], 0  ;;  %s3165_s0 = inlined_call_operand.vmem [shape: f32[64,20], index: 0, kind: input, shape index: {}]   ;;  %s3166_s1 = inlined_call_operand.vmem [shape: f32[64,4], index: 1, kind: input, shape index: {}]   ;;  %s3167_s2 = inlined_call_operand.vmem [shape: f32[20,32], index: 2, kind: input, shape index: {}]   ;;  %s3168_s3 = inlined_call_operand.vmem [shape: f32[1,32], index: 3, kind: input, shape index: {}]   ;;  %s3169_s4 = inlined_call_operand.vmem [shape: f32[64,32], index: 4, kind: input, shape index: {}]   ;;  %s3170_s5 = inlined_call_operand.vmem [shape: f32[64,32], index: 5, kind: input, shape index: {}]   ;;  %s3171_s6 = inlined_call_operand.vmem [shape: f32[160,32], index: 6, kind: input, shape index: {}]   ;;  %s3172_s7 = inlined_call_operand.vmem [shape: f32[1,32], index: 7, kind: input, shape index: {}]   ;;  %s3173_s8 = inlined_call_operand.vmem [shape: f32[1,32], index: 8, kind: input, shape index: {}]   ;;  %s3174_s9 = inlined_call_operand.vmem [shape: f32[1,32], index: 9, kind: input, shape index: {}]   ;;  %s3175_s10 = inlined_call_operand.vmem [shape: f32[32,8], index: 10, kind: input, shape index: {}]   ;;  %s3176_s11 = inlined_call_operand.vmem [shape: f32[8,32], index: 11, kind: input, shape index: {}]   ;;  %s3177_s12 = inlined_call_operand.vmem [shape: f32[4,32], index: 12, kind: input, shape index: {}]   ;;  %s3178_s13 = inlined_call_operand.vmem [shape: f32[1,32], index: 13, kind: input, shape index: {}]   ;;  %s3179_s14 = inlined_call_operand.hbm [shape: f32[64,32], index: 14, kind: output, shape index: {}]  }
   0x1   :  { %21 = vsyncpa [#allocation3 + $0x1], 0  ;;  %s2766_s29 = smov 0   ;;  %s2768_s30 = smov 0  }
   0x2   :  { %s2770_s15 = smov 0   ;;  %s2772_s16 = smov 0  }
   0x3 LB: > { %3184 = sst [smem:[#allocation5_spill]] %s2678_s15  ;;  %s2787_s17 = sadd.s32 4294967295, %s2682_s16   ;;  %s2682_s16 = sphi %s2772_s16, %s3191_s16   ;;  %s2678_s15 = sphi %s2770_s15, %s3193_s15   ;;  %s2674_s30 = sphi %s2768_s30, %s3195_s30   ;;  %s2670_s29 = sphi %s2766_s29, %s3194_s29  }
   0x4   : > { %s2204_s18 = sadd.s32 4294967294, %s2682_s16   ;;  %s2791_s19 = sadd.s32 1, %s2682_s16  }
   0x5   : > { %3185 = sst [smem:[#allocation6_spill]] %s2791_s19  ;;  %s348_s20 = sadd.s32 1, %s2678_s15 }
   0x6   : > { %s345_s21 = ssub.s32 %s2682_s16, %s2791_s19  ;;  %p358_p0 = scmp.ne.s32.totalorder %s2678_s15, %s2674_s30 }
   0x7   : > { %p346_p1 = scmp.eq.s32.totalorder %s345_s21, 0  ;;  %p359_p2 = scmp.eq.s32.totalorder %s2787_s17, 1 }
   0x8   : > { %p364_p3 = scmp.ne.s32.totalorder %s2674_s30, %s2670_s29  ;;  %p365_p4 = scmp.eq.s32.totalorder %s2204_s18, 1 }
   0x9   : > { %s2802_s22 = scalar_select %p346_p1, %s2678_s15, %s348_s20  }
   0xa   : > { %p2804_p5 = por %p359_p2, %p358_p0  ;;  %p2808_p6 = por %p365_p4, %p364_p3 }
   0xb   : > { %3186 = sst [smem:[#allocation7_spill]] %s2802_s22  ;;  %p2207_p7 = scmp.ge.s32.totalorder %s2682_s16, 1 }
   0xc   : > { %s3188_s24 = scalar_select %p2808_p6, 1, 0 }
   0xd   : > { %p449_p8 = scmp.lt.s32.totalorder %s2682_s16, 3 }
   0xe   : > { %3189 = sst [smem:[#allocation8_spill]] %s3188_s24 }
   0xf   : > { %p450_p9 = pnand %p2207_p7, %p449_p8 }
  0x10   : > { %v544_v0 = vld [vmem:[%s3167_s2] sm:$0xff] (!%p450_p9)  ;;  %v545_v1 = vld [vmem:[%s3167_s2 + $0x8] sm:$0xff] (!%p450_p9)  ;;  %s2209_s18 = sshll.u32 (!%p450_p9), %s2787_s17, 2  ;;  %v546_v5 = vld [vmem:[%s3167_s2 + $0x10] sm:$0xf] (!%p450_p9)  ;;  %vm567_vm0 = vcmask (!%p450_p9), 1043456  }
  0x11   : > { %453 = sbr.rel (%p450_p9) target bundleno = 2453 (0x995), region = 76  ;;  %v2446_v2 = vpack.c.bf16 (!%p450_p9), %v545_v1, %v544_v0  ;;  %p511_p10 = scmp.lt.s32.totalorder (!%p450_p9), %s2209_s18, 7  ;;  %v535_v3 = vld [vmem:[%s3175_s10] sm:$0xff] (!%p450_p9)  ;;  %v536_v4 = vld [vmem:[%s3175_s10 + $0x8] sm:$0xff] (!%p450_p9)  ;;  %vm554_vm1 = vcmask (!%p450_p9), 162816   ;;  %v537_v11 = vld [vmem:[%s3175_s10 + $0x10] sm:$0xff] (!%p450_p9) }
  0x12   : > { %v2830_v6 = vpack.c.bf16 (!%p450_p9), %v536_v4, %v535_v3  ;;  %v538_v12 = vld [vmem:[%s3175_s10 + $0x18] sm:$0xff] (!%p450_p9)  ;;  %v2856_v14 = vld [vmem:[%s3176_s11] sm:$0xff] (!%p450_p9)  ;;  %vm656_vm2 = vcmask (!%p450_p9), 261120   ;;  %vm758_vm3 = vcmask (!%p450_p9), 64512   ;;  %v1374_v61 = vld [vmem:[%s3171_s6 + $0x8] sm:$0xff] (!%p450_p9)  ;;  %v2684_v63 = vmov (!%p450_p9), 0.0|0.0  }
  0x13   : > { %2447 = vmatprep.subr.bf16.mxu0 (!%p450_p9), %v2446_v2  ;;  %v2848_v13 = vpack.c.bf16 (!%p450_p9), %v538_v12, %v537_v11  ;;  %v2217_v15 = vld [vmem:[%s3168_s3] ss:$0 sm:$0xff] (!%p450_p9)  ;;  %v1375_v62 = vld [vmem:[%s3171_s6 + $0x10] sm:$0xff] (!%p450_p9)  ;;  %v1376_v1 = vld [vmem:[%s3171_s6 + $0x18] sm:$0xff] (!%p450_p9)  ;;  %vm1282_vm4 = vcmask (!%p450_p9), 1045504   ;;  %vm1216_vm5 = vcmask (!%p450_p9), 1040384  }
  0x14   : > { %2449 = vmatpush3.bf16.msra.mxu0 (!%p450_p9), %v2446_v2  ;;  %2451 = vmatprep.subr.bf16.mxu1 (!%p450_p9), %v2830_v6  ;;  %v1373_v60 = vld [vmem:[%s3171_s6] sm:$0xff] (!%p450_p9)  ;;  %v2470_v2 = vpack.c.bf16 (!%p450_p9), %v1376_v1, %v1375_v62  ;;  %v1378_v4 = vld [vmem:[%s3171_s6 + $0x28] sm:$0xff] (!%p450_p9)  ;;  %vm1249_vm8 = vcmask (!%p450_p9), 1046528   ;;  %vm1183_vm9 = vcmask (!%p450_p9), 1041408   ;;  %s2687_s21 = smov (!%p450_p9), 96   ;;  %s507_s15 = sand.u32 (!%p450_p9), 1, %s2674_s30  }
  0x15   : > { %2342 = vmatprep.subr.msk.mxu0 (!%p450_p9), %vm567_vm0, %v546_v5  ;;  %2453 = vmatpush3.bf16.msra.mxu1 (!%p450_p9), %v2830_v6  ;;  %v2467_v0 = vpack.c.bf16 (!%p450_p9), %v1374_v61, %v1373_v60  ;;  %v1377_v3 = vld [vmem:[%s3171_s6 + $0x20] sm:$0xff] (!%p450_p9)  ;;  %v1382_v11 = vld [vmem:[%s3171_s6 + $0x48] sm:$0xff] (!%p450_p9)  ;;  %v1126_v61 = vlaneseq (!%p450_p9)  ;;  %s2208_s24 = sshll.u32 (!%p450_p9), %s507_s15, 5  ;;  %s2688_s22 = smov (!%p450_p9), [#allocation2]  }
  0x16   : > { %2455 = vmatprep.subr.bf16.mxu1 (!%p450_p9), %v2848_v13  ;;  %s509_s26 = scalar_lea.vmem (!%p450_p9), [#allocation2], %s2208_s24 }
  0x18   : > { %s3197_s18 = smov (!%p511_p10, %s2209_s18), 7  ;;  %2343 = vmatpush3.msk.msra.mxu0 %vm567_vm0, %v546_v5  ;;  %v2473_v5 = vpack.c.bf16 %v1378_v4, %v1377_v3 }
  0x19   : > { %s2834_s25 = sshll.u32 %s3197_s18, 3  ;;  %2457 = vmatpush3.bf16.msra.mxu1 %v2848_v13  ;;  %2364 = vmatprep.subr.mxu0 %v2856_v14  ;;  %s2685_s18 = smov 32  }
  0x1a   : > { %s514_s19 = scalar_lea.vmem %s3165_s0, %s2834_s25  ;;  %2459 = vmatprep.subr.bf16.mxu1 %v2830_v6  ;;  %s526_s27 = scalar_lea.vmem %s3169_s4, %s2834_s25 }
  0x1b   : > { %v540_v7 = vld [vmem:[%s514_s19] sm:$0xff]  ;;  %v541_v8 = vld [vmem:[%s514_s19 + $0x8] sm:$0xff]  ;;  %v542_v9 = vld [vmem:[%s514_s19 + $0x10] sm:$0xff]  ;;  %s532_s20 = scalar_lea.vmem %s3170_s5, %s2834_s25  ;;  %s520_s28 = scalar_lea.vmem %s3166_s1, %s2834_s25 }
  0x1c   : > { %2344 = vmatprep.mubr.msk.f32.mxu0 %vm554_vm1, %v540_v7  ;;  %v543_v10 = vld [vmem:[%s514_s19 + $0x18] sm:$0xff]  ;;  %v1379_v7 = vld [vmem:[%s3171_s6 + $0x30] sm:$0xff]  ;;  %s2624_s19 = sshll.u32 %s2688_s22, 4  ;;  %s2625_s19 = int_to_ptr.vmem [resolvable:$false] %s2624_s19 }
  0x1d   : > { %2345 = vmatmul.mubr.msk.f32.vlgmr.msra.gmra.mrb[0].mxu0 %vm554_vm1, %v541_v8  ;;  %v1380_v8 = vld [vmem:[%s3171_s6 + $0x38] sm:$0xff]  ;;  %s2626_s24 = scalar_lea.vmem %s2625_s19, 1024 }
  0x1e   : > { %2347 = vmatprep.mubr.msk.f32.mxu0 %vm554_vm1, %v542_v9  ;;  %2365 = vmatpush3.msra.mxu0 %v2856_v14  ;;  %v2476_v9 = vpack.c.bf16 %v1380_v8, %v1379_v7  ;;  %v1127_v8 = vshrl.u32 %v1126_v61, 7 }
  0x1f   : > { %2386 = vmatprep.subr.mxu0 %v2856_v14 }
  0x21   : > { %2348 = vmatmul.mubr.msk.f32.gmra.mrb[2].mxu0 %vm554_vm1, %v543_v10  ;;  %v1381_v10 = vld [vmem:[%s3171_s6 + $0x40] sm:$0xff]  ;;  %vm1363_vm1 = vcmask 523264  }
  0x22   : > { %v2479_v12 = vpack.c.bf16 %v1382_v11, %v1381_v10  ;;  %v1128_v11 = vadd.s32 8, %v1127_v8 }
  0xf0   : > { %v2346_v16 = vpop.f32.mrb[0].mxu0 }
  0xf1   : > { %v637_v17 = vpop.f32.mrb[1].mxu0  ;;  %v643_v19 = vadd.f32 %v2346_v16, %v2217_v15  ;;  %v1384_v16 = vld [vmem:[%s3171_s6 + $0x58] sm:$0xff] }
  0xf2   : > { %v638_v18 = vadd.f32 %v2217_v15, %v637_v17 }
  0xf4   : > { %v2349_v20 = vpop.f32.mrb[2].mxu0  ;;  %2358 = vmatprep.mubr.msk.f32.mxu1 %vm656_vm2, %v638_v18 }
  0xf5   : > { %v653_v21 = vadd.f32 %v2349_v20, %v2217_v15  ;;  %v647_v22 = vpop.f32.mrb[3].mxu0  ;;  %2359 = vmatmul.mubr.msk.f32.vlgmr.msra.gmra.mrb[0].mxu1 %vm656_vm2, %v643_v19 }
  0xf6   : > { %v648_v23 = vadd.f32 %v2217_v15, %v647_v22  ;;  %2461 = vmatpush3.bf16.msra.mxu1 %v2830_v6  ;;  %v1383_v15 = vld [vmem:[%s3171_s6 + $0x50] sm:$0xff]  ;;  %v1388_v22 = vld [vmem:[%s3171_s6 + $0x78] sm:$0xff] }
  0xf7   : > { %2463 = vmatprep.subr.bf16.mxu1 %v2848_v13  ;;  %v2482_v17 = vpack.c.bf16 %v1384_v16, %v1383_v15  ;;  %v1135_v16 = vand.u32 15, %v1127_v8 }
  0xf8   : > { %2361 = vmatprep.mubr.msk.f32.mxu1 %vm656_vm2, %v648_v23 }
  0xf9   : > { %2362 = vmatmul.mubr.msk.f32.gmra.mrb[2].mxu1 %vm656_vm2, %v653_v21 }
  0xfa   : > { %2465 = vmatpush3.bf16.msra.mxu1 %v2848_v13 }
  0xfb   : > { %2466 = vmatprep.subr.bf16.mxu1 %v2684_v63 }
 0x1c8   : > { %v2360_v24 = vpop.f32.mrb[0].mxu1 }
 0x1c9   : > { %v735_v25 = vpop.f32.mrb[1].mxu1  ;;  %v755_v27 = vmul.f32 0.25, %v2360_v24 }
 0x1ca   : > { %v754_v26 = vmul.f32 0.25, %v735_v25  ;;  %v1075_v25 = vld [vmem:[%s526_s27 + $0x8] sm:$0xff] }
 0x1cc   : > { %v2363_v28 = vpop.f32.mrb[2].mxu1  ;;  %2366 = vmatprep.mubr.msk.f32.mxu0 %vm758_vm3, %v754_v26 }
 0x1cd   : > { %v745_v29 = vpop.f32.mrb[3].mxu1  ;;  %2367 = vmatmul.mubr.msk.f32.vlgmr.msra.gmra.mrb[4].mxu0 %vm758_vm3, %v755_v27  ;;  %v757_v31 = vmul.f32 0.25, %v2363_v28  ;;  %v1074_v28 = vld [vmem:[%s526_s27] sm:$0xff] }
 0x1ce   : > { %v756_v30 = vmul.f32 0.25, %v745_v29  ;;  %2387 = vmatpush3.msra.mxu0 %v2856_v14  ;;  %v1083_v29 = vld [vmem:[%s532_s20 + $0x8] sm:$0xff] }
 0x1cf   : > { %2497 = vmatprep.subr.bf16.mxu0 %v2830_v6 }
 0x1d0   : > { %2369 = vmatprep.mubr.msk.f32.mxu0 %vm758_vm3, %v756_v30 }
 0x1d1   : > { %2370 = vmatmul.mubr.msk.f32.gmra.mrb[6].mxu0 %vm758_vm3, %v757_v31 }
 0x2a0   : > { %v2368_v32 = vpop.f32.mrb[4].mxu0 }
 0x2a1   : > { %v2877_v33 = vsub.f32 %v643_v19, %v2368_v32  ;;  %v837_v34 = vpop.f32.mrb[5].mxu0  ;;  %v1386_v19 = vld [vmem:[%s3171_s6 + $0x68] sm:$0xff]  ;;  %v1082_v32 = vld [vmem:[%s532_s20] sm:$0xff] }
 0x2a2   : > { %v2879_v35 = vsub.f32 %v638_v18, %v837_v34  ;;  %v1385_v18 = vld [vmem:[%s3171_s6 + $0x60] sm:$0xff] }
 0x2a3   : > { %v861_v38 = vmul.f32 %v2877_v33, %v2877_v33  ;;  %v2485_v20 = vpack.c.bf16 %v1386_v19, %v1385_v18  ;;  %v1196_v19 = vadd.s32 4294967294, %v1135_v16 }
 0x2a4   : > { %v860_v36 = vmul.f32 %v2879_v35, %v2879_v35  ;;  %v2371_v37 = vpop.f32.mrb[6].mxu0 }
 0x2a5   : > { %v2885_v39 = vsub.f32 %v653_v21, %v2371_v37  ;;  %v847_v40 = vpop.f32.mrb[7].mxu0  ;;  %v1387_v21 = vld [vmem:[%s3171_s6 + $0x70] sm:$0xff]  ;;  %v1077_v37 = vld [vmem:[%s526_s27 + $0x18] sm:$0xff]  ;;  %vm1200_vm6 = vcmp.ge.s32.totalorder %v1196_v19, 0 }
 0x2a6   : > { %v2887_v41 = vsub.f32 %v648_v23, %v847_v40  ;;  %2380 = vmatprep.mubr.msk.f32.mxu1 %vm656_vm2, %v860_v36  ;;  %v2488_v23 = vpack.c.bf16 %v1388_v22, %v1387_v21  ;;  %v2986_v21 = vadd.s32 24, %v1127_v8  ;;  %v1389_v22 = vld [vmem:[%s3171_s6 + $0x80] sm:$0xff] }
 0x2a7   : > { %2381 = vmatmul.mubr.msk.f32.vlgmr.msra.gmra.mrb[4].mxu1 %vm656_vm2, %v861_v38  ;;  %v863_v43 = vmul.f32 %v2885_v39, %v2885_v39 }
 0x2a8   : > { %v862_v42 = vmul.f32 %v2887_v41, %v2887_v41  ;;  %2468 = vmatpush1.bf16.msra.mxu1 %v2467_v0 }
 0x2a9   : > { %2469 = vmatprep.subr.bf16.mxu1 %v2684_v63 }
 0x2aa   : > { %2383 = vmatprep.mubr.msk.f32.mxu1 %vm656_vm2, %v862_v42 }
 0x2ab   : > { %2384 = vmatmul.mubr.msk.f32.gmra.mrb[6].mxu1 %vm656_vm2, %v863_v43  ;;  %v1076_v43 = vld [vmem:[%s526_s27 + $0x10] sm:$0xff]  ;;  %s2106_s27 = sshll.u32 %s509_s26, 4  ;;  %s3118_s27 = int_to_ptr.vmem [resolvable:$true] %s2106_s27 }
 0x2ac   : > { %2471 = vmatpush1.bf16.msra.mxu1 %v2470_v2  ;;  %p2627_p0 = scmp.lt.s32.totalorder %s3118_s27, %s2625_s19 }
 0x2ad   : > { %2472 = vmatprep.subr.bf16.mxu1 %v2684_v63 }
 0x2b0   : > { %2474 = vmatpush1.bf16.msra.mxu1 %v2473_v5 }
 0x2b1   : > { %2475 = vmatprep.subr.bf16.mxu1 %v2684_v63 }
 0x2b4   : > { %2477 = vmatpush1.bf16.msra.mxu1 %v2476_v9 }
 0x2b5   : > { %2478 = vmatprep.subr.bf16.mxu1 %v2684_v63 }
 0x2b8   : > { %2480 = vmatpush1.bf16.msra.mxu1 %v2479_v12  ;;  %v1129_v12 = vadd.s32 16, %v1127_v8 }
 0x2b9   : > { %2481 = vmatprep.subr.bf16.mxu1 %v2684_v63 }
 0x2ba   : > { %v1149_v18 = vand.u32 15, %v1129_v12 }
 0x2bc   : > { %2483 = vmatpush1.bf16.msra.mxu1 %v2482_v17  ;;  %v1142_v17 = vand.u32 15, %v1128_v11 }
 0x2bd   : > { %2484 = vmatprep.subr.bf16.mxu1 %v2684_v63 }
 0x2c0   : > { %2486 = vmatpush1.bf16.msra.mxu1 %v2485_v20  ;;  %v1229_v20 = vadd.s32 4294967295, %v1135_v16 }
 0x2c1   : > { %2487 = vmatprep.subr.bf16.mxu1 %v2684_v63 }
 0x2c2   : > { %vm1233_vm7 = vcmp.ge.s32.totalorder %v1229_v20, 0 }
 0x2c4   : > { %2489 = vmatpush1.bf16.msra.mxu1 %v2488_v23  ;;  %v1390_v23 = vld [vmem:[%s3171_s6 + $0x88] sm:$0xff] }
 0x2c5   : > { %2490 = vmatprep.subr.bf16.mxu1 %v2684_v63 }
 0x37a   : > { %v2382_v44 = vpop.f32.mrb[4].mxu1 }
 0x37b   : > { %v962_v45 = vmul.f32 0.25, %v2382_v44  ;;  %v942_v46 = vpop.f32.mrb[5].mxu1 }
 0x37c   : > { %v961_v47 = vmul.f32 0.25, %v942_v46 }
 0x37d   : > { %v966_v48 = vadd.f32 1e-05, %v962_v45  ;;  %v1085_v45 = vld [vmem:[%s532_s20 + $0x18] sm:$0xff] }
 0x37e   : > { %v965_v49 = vadd.f32 1e-05, %v961_v47  ;;  %v2385_v50 = vpop.f32.mrb[6].mxu1 }
 0x37f   : > { %v964_v51 = vmul.f32 0.25, %v2385_v50  ;;  %v952_v52 = vpop.f32.mrb[7].mxu1 }
 0x380   : > { %2572 = vrsqrt.f32 %v965_v49  ;;  %v963_v53 = vmul.f32 0.25, %v952_v52 }
 0x381   : > { %2574 = vrsqrt.f32 %v966_v48  ;;  %v968_v54 = vadd.f32 1e-05, %v964_v51 }
 0x382   : > { %v967_v55 = vadd.f32 1e-05, %v963_v53 }
 0x384   : > { %2576 = vrsqrt.f32 %v967_v55 }
 0x385   : > { %2578 = vrsqrt.f32 %v968_v54 }
 0x38a   : > { %v2573_v56 = vpop.eup %2572 }
 0x38b   : > { %v2575_v57 = vpop.eup %2574  ;;  %2388 = vmatprep.mubr.msk.f32.mxu0 %vm758_vm3, %v2573_v56 }
 0x38c   : > { %2389 = vmatmul.mubr.msk.f32.vlgmr.msra.gmra.mrb[8].mxu0 %vm758_vm3, %v2575_v57 }
 0x38d   : > { %2499 = vmatpush3.bf16.msra.mxu0 %v2830_v6 }
 0x38e   : > { %v2577_v58 = vpop.eup %2576  ;;  %2501 = vmatprep.subr.bf16.mxu0 %v2848_v13 }
 0x38f   : > { %v2579_v59 = vpop.eup %2578  ;;  %2391 = vmatprep.mubr.msk.f32.mxu0 %vm758_vm3, %v2577_v58 }
 0x390   : > { %2392 = vmatmul.mubr.msk.f32.gmra.mrb[10].mxu0 %vm758_vm3, %v2579_v59 }
 0x391   : > { %2503 = vmatpush3.bf16.msra.mxu0 %v2848_v13 }
 0x392   : > { %2408 = vmatprep.subr.mxu0 %v2856_v14 }
 0x45f   : > { %v2390_v24 = vpop.f32.mrb[8].mxu0 }
 0x460   : > { %v1071_v26 = vmul.f32 %v2390_v24, %v2877_v33  ;;  %v1051_v27 = vpop.f32.mrb[9].mxu0 }
 0x461   : > { %v1070_v30 = vmul.f32 %v1051_v27, %v2879_v35  ;;  %v1084_v35 = vld [vmem:[%s532_s20 + $0x10] sm:$0xff]  ;;  %v2994_v27 = vadd.s32 4294967294, %v1149_v18  ;;  %s2686_s20 = smov 64  }
 0x462   : > { %v1079_v31 = vmul.f32 %v1075_v25, %v1071_v26  ;;  %v1263_v25 = vadd.s32 1, %v1142_v17  ;;  %v2491_v26 = vpack.c.bf16 %v1390_v23, %v1389_v22 }
 0x463   : > { %v1078_v34 = vmul.f32 %v1074_v28, %v1070_v30  ;;  %v2393_v36 = vpop.f32.mrb[10].mxu0  ;;  %vm1202_vm11 = vcmp.ge.s32.totalorder %v2994_v27, 0 }
 0x464   : > { %v2972_v38 = vadd.f32 %v1083_v29, %v1079_v31  ;;  %v1073_v40 = vmul.f32 %v2393_v36, %v2885_v39  ;;  %v1061_v42 = vpop.f32.mrb[11].mxu0  ;;  %2492 = vmatpush1.bf16.msra.mxu1 %v2491_v26  ;;  %v1391_v36 = vld [vmem:[%s3171_s6 + $0x90] sm:$0xff]  ;;  %vm1271_vm10 = vcmp.lt.s32.totalorder %v1263_v25, 16 }
 0x465   : > { %v2975_v44 = vadd.f32 %v1082_v32, %v1078_v34  ;;  %v1072_v33 = vmul.f32 %v1061_v42, %v2887_v41  ;;  %v2999_v32 = vadd.s32 4294967295, %v1149_v18  ;;  %v1156_v34 = vand.u32 15, %v2986_v21  ;;  %2493 = vmatprep.subr.bf16.mxu1 %v2684_v63 }
 0x466   : > { %v1091_v46 = vmin.f32 %v2972_v38, 20.0  ;;  %v1081_v47 = vmul.f32 %v1077_v37, %v1073_v40  ;;  %v1392_v37 = vld [vmem:[%s3171_s6 + $0x98] sm:$0xff] }
 0x467   : > { %v1090_v48 = vmin.f32 %v2975_v44, 20.0  ;;  %v1080_v49 = vmul.f32 %v1076_v43, %v1072_v33  ;;  %vm1235_vm14 = vcmp.ge.s32.totalorder %v2999_v32, 0  ;;  %v1265_v27 = vadd.s32 1, %v1156_v34 }
 0x468   : > { %v1096_v50 = vmul.f32 1.442695, %v1091_v46  ;;  %v2980_v51 = vadd.f32 %v1085_v45, %v1081_v47 }
 0x469   : > { %v1094_v52 = vmul.f32 1.442695, %v1090_v48  ;;  %v2982_v53 = vadd.f32 %v1084_v35, %v1080_v49  ;;  %vm1273_vm15 = vcmp.lt.s32.totalorder %v1265_v27, 16  ;;  %v1975_v27 = vld [vmem:[%s3177_s12] sm:$0xf] }
 0x46a   : > { %2580 = vpow2.f32 %v1096_v50  ;;  %v1093_v39 = vmin.f32 %v2980_v51, 20.0 }
 0x46b   : > { %2582 = vpow2.f32 %v1094_v52  ;;  %v1092_v54 = vmin.f32 %v2982_v53, 20.0 }
 0x46c   : > { %v1100_v41 = vmul.f32 1.442695, %v1093_v39  ;;  %v1296_v39 = vadd.s32 2, %v1142_v17 }
 0x46d   : > { %v1098_v55 = vmul.f32 1.442695, %v1092_v54 }
 0x46e   : > { %2584 = vpow2.f32 %v1100_v41  ;;  %vm1304_vm12 = vcmp.lt.s32.totalorder %v1296_v39, 16 }
 0x46f   : > { %2586 = vpow2.f32 %v1098_v55 }
 0x474   : > { %v2581_v56 = vpop.eup %2580 }
 0x475   : > { %v2583_v57 = vpop.eup %2582  ;;  %v1103_v58 = vadd.f32 2.0, %v2581_v56 }
 0x476   : > { %v1102_v59 = vadd.f32 2.0, %v2583_v57 }
 0x477   : > { %v1107_v60 = vmul.f32 %v2581_v56, %v1103_v58 }
 0x478   : > { %v2585_v62 = vpop.eup %2584  ;;  %v1106_v0 = vmul.f32 %v2583_v57, %v1102_v59 }
 0x479   : > { %v2587_v1 = vpop.eup %2586  ;;  %v1111_v2 = vadd.f32 2.0, %v1107_v60  ;;  %v1105_v3 = vadd.f32 2.0, %v2585_v62 }
 0x47a   : > { %v1110_v4 = vadd.f32 2.0, %v1106_v0  ;;  %v1104_v5 = vadd.f32 2.0, %v2587_v1 }
 0x47b   : > { %2588 = vrcp.f32 %v1111_v2  ;;  %v1109_v7 = vmul.f32 %v2585_v62, %v1105_v3  ;;  %v1298_v3 = vadd.s32 2, %v1156_v34 }
 0x47c   : > { %2590 = vrcp.f32 %v1110_v4  ;;  %v1108_v9 = vmul.f32 %v2587_v1, %v1104_v5 }
 0x47d   : > { %v1113_v10 = vadd.f32 2.0, %v1109_v7  ;;  %vm1306_vm13 = vcmp.lt.s32.totalorder %v1298_v3, 16 }
 0x47e   : > { %v1112_v15 = vadd.f32 2.0, %v1108_v9 }
 0x47f   : > { %2592 = vrcp.f32 %v1113_v10 }
 0x480   : > { %2594 = vrcp.f32 %v1112_v15 }
 0x485   : > { %v2589_v24 = vpop.eup %2588 }
 0x486   : > { %v2591_v28 = vpop.eup %2590  ;;  %v1117_v29 = vmul.f32 %v2589_v24, %v1107_v60 }
 0x487   : > { %v1115_v30 = vmul.f32 %v2591_v28, %v1106_v0 }
 0x488   : > { %v2997_v31 = vmul.f32 %v1117_v29, %v2972_v38  ;;  %v2494_v38 = vpack.c.bf16 %v1392_v37, %v1391_v36 }
 0x489   : > { %v2593_v40 = vpop.eup %2592  ;;  %v1122_v42 = vmul.f32 %v1115_v30, %v2975_v44 }
 0x48a   : > { %v2595_v43 = vpop.eup %2594  ;;  %v1121_v45 = vmul.f32 %v2593_v40, %v1109_v7  ;;  %v1284_v33 = vrot.slane %v2997_v31, 2  ;;  %v1218_v63 = vrot.slane %v2997_v31, 7  ;;  %v1251_v46 = vrot.slane %v2997_v31, 1  ;;  %2495 = vmatpush1.bf16.msra.mxu1 %v2494_v38 }
 0x48b   : > { %v1119_v47 = vmul.f32 %v2595_v43, %v1108_v9  ;;  %v1283_v35 = vrot.slane %v1122_v42, 2  ;;  %v1217_v48 = vrot.slane %v1122_v42, 7  ;;  %v2562_v49 = vpack.i.bf16 %v2997_v31, %v1122_v42 }
 0x48c   : > { %v1125_v44 = vmul.f32 %v1121_v45, %v2980_v51  ;;  %v1250_v50 = vrot.slane %v1122_v42, 1  ;;  %v1184_v52 = vrot.slane %v1122_v42, 6  ;;  %v1185_v1 = vrot.slane %v2997_v31, 6 }
 0x48d   : > { %v1124_v54 = vmul.f32 %v1119_v47, %v2982_v53  ;;  %v1285_v41 = vsel %vm1282_vm4, %v1283_v35, %v1284_v33  ;;  %v1219_v55 = vsel %vm1216_vm5, %v1217_v48, %v1218_v63  ;;  %v1228_v56 = vsel %vm1216_vm5, 0.0, %v1217_v48 }
 0x48e   : > { %2240 = vmatprep.mubr.msk.f32.mxu1 %vm656_vm2, %v1285_v41  ;;  %v1245_v57 = vsel %vm1233_vm7, %v1228_v56, 0.0  ;;  %v1252_v58 = vsel %vm1249_vm8, %v1250_v50, %v1251_v46  ;;  %v1222_v59 = vrot.slane %v1125_v44, 7  ;;  %v1255_v60 = vrot.slane %v1125_v44, 1 }
 0x48f   : > { %v2557_v51 = vpack.i.bf16 %v1219_v55, %v1245_v57  ;;  %v1253_v61 = vrot.slane %v1124_v54, 1  ;;  %v1220_v62 = vrot.slane %v1124_v54, 7  ;;  %v1195_v0 = vsel %vm1183_vm9, 0.0, %v1184_v52  ;;  %v2239_v57 = vld [vmem:[%s3172_s7] ss:$0 sm:$0xff] }
 0x490   : > { %v1212_v53 = vsel %vm1200_vm6, %v1195_v0, 0.0  ;;  %v1187_v2 = vrot.slane %v1124_v54, 6  ;;  %v1286_v15 = vrot.slane %v1124_v54, 2  ;;  %v1189_v16 = vrot.slane %v1125_v44, 6 }
 0x491   : > { %2558 = vrot.lane.b32.xlu0 %v2557_v51, %s2685_s18  ;;  %v1254_v4 = vsel %vm1249_vm8, %v1251_v46, %v1253_v61  ;;  %v1221_v5 = vsel %vm1216_vm5, %v1218_v63, %v1220_v62  ;;  %v1223_v7 = vsel %vm1216_vm5, %v1220_v62, %v1222_v59  ;;  %v1256_v8 = vsel %vm1249_vm8, %v1253_v61, %v1255_v60 }
 0x492   : > { %v1279_v9 = vsel %vm1271_vm10, %v1254_v4, 0.0  ;;  %v1188_v10 = vsel %vm1183_vm9, %v1185_v1, %v1187_v2  ;;  %v1186_v17 = vsel %vm1183_vm9, %v1184_v52, %v1185_v1  ;;  %v1288_v18 = vrot.slane %v1125_v44, 2 }
 0x493   : > { %v2567_v11 = vpack.i.bf16 %v1279_v9, %v1252_v58  ;;  %v1214_v12 = vsel %vm1202_vm11, %v1188_v10, 0.0  ;;  %v1287_v19 = vsel %vm1282_vm4, %v1284_v33, %v1286_v15  ;;  %v1190_v20 = vsel %vm1183_vm9, %v1187_v2, %v1189_v16 }
 0x494   : > { %v1312_v22 = vsel %vm1304_vm12, %v1287_v19, 0.0  ;;  %v1289_v23 = vsel %vm1282_vm4, %v1286_v15, %v1288_v18  ;;  %v1294_v24 = vsel %vm1282_vm4, %v1288_v18, 0.0  ;;  %v1247_v26 = vsel %vm1235_vm14, %v1221_v5, 0.0 }
 0x495   : > { %2563 = vrot.lane.b32.xlu0 %v2562_v49, %s2686_s20  ;;  %2568 = vrot.lane.b32.xlu1 %v2567_v11, %s2687_s21  ;;  %v1314_v25 = vsel %vm1306_vm13, %v1294_v24, 0.0  ;;  %v1261_v28 = vsel %vm1249_vm8, %v1255_v60, 0.0  ;;  %vm1368_vm4 = vcmask 785408   ;;  %vm1983_vm5 = vcmask 31744  }
 0x496   : > { %v1281_v29 = vsel %vm1273_vm15, %v1261_v28, 0.0 }
 0x499   : > { %1335 = vrot.lane.b32.xlu0 %v1124_v54, %s2686_s20  ;;  %1323 = vrot.lane.b32.xlu1 %v1247_v26, %s2685_s18 }
 0x49d   : > { %1325 = vrot.lane.b32.xlu0 %v1223_v7, %s2685_s18  ;;  %1351 = vrot.lane.b32.xlu1 %v1256_v8, %s2687_s21 }
 0x4a1   : > { %1353 = vrot.lane.b32.xlu0 %v1281_v29, %s2687_s21  ;;  %1337 = vrot.lane.b32.xlu1 %v1125_v44, %s2686_s20  ;;  %s2620_s21 = scalar_lea.vmem %s3118_s27, 512 }
 0x4a2   : > { %p2621_p11 = scmp.ne.s32.totalorder %s3118_s27, %s2620_s21  ;;  %p2628_p1 = scmp.lt.s32.totalorder %s2626_s24, %s2620_s21 }
 0x4a4   : > { %p2622_p12 = pnand %p2621_p11, %p2804_p5  ;;  %p2629_p2 = por %p2628_p1, %p2627_p0 }
 0x4a6   : > { %p2623_p13 = pneg %p2622_p12 }
 0x4a8   : > { %p2630_p3 = pnand %p2629_p2, %p2623_p13 }
 0x503   : > { %v2559_v30 = vpop.permute.xlu0 %2558 }
 0x504   : > { %v2560_v31 = vunpack.i.l.bf16 %v2559_v30  ;;  %v2561_v32 = vunpack.i.h.bf16 %v2559_v30 }
 0x506   : > { %v1359_v21 = vsel %vm656_vm2, %v1212_v53, %v2560_v31  ;;  %v1360_v46 = vsel %vm656_vm2, %v1186_v17, %v2561_v32 }
 0x507   : > { %v2564_v36 = vpop.permute.xlu0 %2563  ;;  %v2569_v37 = vpop.permute.xlu1 %2568 }
 0x508   : > { %v2566_v40 = vunpack.i.h.bf16 %v2564_v36  ;;  %v2565_v42 = vunpack.i.l.bf16 %v2564_v36  ;;  %v2570_v38 = vunpack.i.l.bf16 %v2569_v37  ;;  %v2571_v43 = vunpack.i.h.bf16 %v2569_v37 }
 0x50a   : > { %v1364_v34 = vsel %vm1363_vm1, %v1359_v21, %v2565_v42  ;;  %v1365_v47 = vsel %vm1363_vm1, %v1360_v46, %v2566_v40  ;;  %v1972_v46 = vld [vmem:[%s520_s28 + $0x8] sm:$0xff] }
 0x50b   : > { %v1336_v45 = vpop.permute.xlu0 %1335  ;;  %v1324_v33 = vpop.permute.xlu1 %1323  ;;  %v1369_v63 = vsel %vm1368_vm4, %v1364_v34, %v2570_v38  ;;  %v1370_v44 = vsel %vm1368_vm4, %v1365_v47, %v2571_v43  ;;  %v1973_v47 = vld [vmem:[%s520_s28 + $0x10] sm:$0xff] }
 0x50c   : > { %1477 = vmatmul.mubr.f32.vlgmr.msra.gmra.mrb[8].mxu1 %v1369_v63  ;;  %v1361_v35 = vsel %vm656_vm2, %v1214_v12, %v1324_v33  ;;  %v1971_v33 = vld [vmem:[%s520_s28] sm:$0xff] }
 0x50d   : > { %2241 = vmatprep.mubr.msk.f32.mxu1 %vm656_vm2, %v1312_v22  ;;  %v1366_v50 = vsel %vm1363_vm1, %v1361_v35, %v1336_v45  ;;  %v1974_v35 = vld [vmem:[%s520_s28 + $0x18] sm:$0xff]  ;;  %s2273_s28 = sshll.u32 %s2787_s17, 9  ;;  %s3124_s17 = scalar_lea.sflag [#allocation3], %s507_s15 }
 0x50e   : > { %s3116_s25 = scalar_lea.hbm %s3179_s14, %s2273_s28 }
 0x50f   : > { %v1326_v48 = vpop.permute.xlu0 %1325  ;;  %v1352_v49 = vpop.permute.xlu1 %1351 }
 0x510   : > { %1482 = vmatmul.mubr.f32.gmra.mrb[10].mxu1 %v1370_v44  ;;  %v1362_v52 = vsel %vm656_vm2, %v1190_v20, %v1326_v48  ;;  %v1371_v54 = vsel %vm1368_vm4, %v1366_v50, %v1352_v49  ;;  %v2260_v49 = vld [vmem:[%s3173_s8] ss:$0 sm:$0xff] }
 0x511   : > { %2242 = vmatprep.mubr.msk.f32.mxu1 %vm656_vm2, %v1289_v23 }
 0x513   : > { %v1338_v39 = vpop.permute.xlu1 %1337  ;;  %v1354_v41 = vpop.permute.xlu0 %1353 }
 0x514   : > { %v1367_v55 = vsel %vm1363_vm1, %v1362_v52, %v1338_v39  ;;  %1487 = vmatmul.mubr.f32.gmra.mrb[12].mxu1 %v1371_v54  ;;  %v2261_v52 = vld [vmem:[%s3174_s9] ss:$0 sm:$0xff] }
 0x515   : > { %2243 = vmatprep.mubr.msk.f32.mxu1 %vm656_vm2, %v1314_v25  ;;  %v1372_v56 = vsel %vm1368_vm4, %v1367_v55, %v1354_v41 }
 0x518   : > { %1492 = vmatmul.mubr.f32.gmra.mrb[14].mxu1 %v1372_v56 }
 0x5df   : > { %v1478_v58 = vpop.f32.mrb[8].mxu1 }
 0x5e0   : > { %v1479_v59 = vadd.f32 %v2239_v57, %v1478_v58  ;;  %v1480_v60 = vpop.f32.mrb[9].mxu1 }
 0x5e2   : > { %2402 = vmatprep.mubr.msk.f32.mxu0 %vm656_vm2, %v1479_v59 }
 0x5e3   : > { %v1483_v51 = vpop.f32.mrb[10].mxu1 }
 0x5e4   : > { %v1484_v61 = vadd.f32 %v2239_v57, %v1483_v51  ;;  %v1485_v62 = vpop.f32.mrb[11].mxu1 }
 0x5e6   : > { %2403 = vmatmul.mubr.msk.f32.vlgmr.msra.gmra.mrb[12].mxu0 %vm656_vm2, %v1484_v61 }
 0x5e7   : > { %v1488_v0 = vpop.f32.mrb[12].mxu1  ;;  %2409 = vmatpush3.msra.mxu0 %v2856_v14 }
 0x5e8   : > { %v1489_v53 = vadd.f32 %v2239_v57, %v1488_v0  ;;  %v1490_v1 = vpop.f32.mrb[13].mxu1  ;;  %2505 = vmatprep.subr.bf16.mxu0 %v2830_v6 }
 0x5ea   : > { %2405 = vmatprep.mubr.msk.f32.mxu0 %vm656_vm2, %v1489_v53 }
 0x5eb   : > { %v1493_v2 = vpop.f32.mrb[14].mxu1 }
 0x5ec   : > { %v1494_v3 = vadd.f32 %v2239_v57, %v1493_v2  ;;  %v1495_v4 = vpop.f32.mrb[15].mxu1 }
 0x5ee   : > { %2406 = vmatmul.mubr.msk.f32.gmra.mrb[14].mxu0 %vm656_vm2, %v1494_v3 }
 0x6b9   : > { %v2404_v5 = vpop.f32.mrb[12].mxu0 }
 0x6ba   : > { %v1575_v7 = vpop.f32.mrb[13].mxu0  ;;  %v1595_v9 = vmul.f32 0.25, %v2404_v5 }
 0x6bb   : > { %v1594_v8 = vmul.f32 0.25, %v1575_v7 }
 0x6bd   : > { %2410 = vmatprep.mubr.msk.f32.mxu0 %vm758_vm3, %v1594_v8 }
 0x6be   : > { %2411 = vmatmul.mubr.msk.f32.vlgmr.msra.gmra.mrb[16].mxu0 %vm758_vm3, %v1595_v9 }
 0x6bf   : > { %2507 = vmatpush3.bf16.msra.mxu0 %v2830_v6 }
 0x6c0   : > { %2509 = vmatprep.subr.bf16.mxu0 %v2848_v13 }
 0x6c1   : > { %v2407_v10 = vpop.f32.mrb[14].mxu0 }
 0x6c2   : > { %v1585_v11 = vpop.f32.mrb[15].mxu0  ;;  %v1597_v15 = vmul.f32 0.25, %v2407_v10 }
 0x6c3   : > { %v1596_v12 = vmul.f32 0.25, %v1585_v11  ;;  %2511 = vmatpush3.bf16.msra.mxu0 %v2848_v13 }
 0x6c4   : > { %2430 = vmatprep.subr.mxu0 %v2856_v14 }
 0x6c5   : > { %2413 = vmatprep.mubr.msk.f32.mxu0 %vm758_vm3, %v1596_v12 }
 0x6c6   : > { %2414 = vmatmul.mubr.msk.f32.gmra.mrb[18].mxu0 %vm758_vm3, %v1597_v15 }
 0x791   : > { %v2412_v16 = vpop.f32.mrb[16].mxu0 }
 0x792   : > { %v1696_v17 = vsub.f32 %v1484_v61, %v2412_v16  ;;  %v1676_v18 = vpop.f32.mrb[17].mxu0 }
 0x793   : > { %v1695_v19 = vsub.f32 %v1479_v59, %v1676_v18 }
 0x794   : > { %v1700_v6 = vmul.f32 %v1696_v17, %v1696_v17 }
 0x795   : > { %v1699_v20 = vmul.f32 %v1695_v19, %v1695_v19 }
 0x797   : > { %2424 = vmatprep.mubr.msk.f32.mxu0 %vm656_vm2, %v1699_v20 }
 0x798   : > { %2425 = vmatmul.mubr.msk.f32.vlgmr.msra.gmra.mrb[20].mxu0 %vm656_vm2, %v1700_v6 }
 0x799   : > { %v2415_v22 = vpop.f32.mrb[18].mxu0  ;;  %2431 = vmatpush3.msra.mxu0 %v2856_v14 }
 0x79a   : > { %v1698_v13 = vsub.f32 %v1494_v3, %v2415_v22  ;;  %v1686_v23 = vpop.f32.mrb[19].mxu0  ;;  %2438 = vmatprep.subr.msk.mxu0 %vm567_vm0, %v1975_v27 }
 0x79b   : > { %v1697_v24 = vsub.f32 %v1489_v53, %v1686_v23 }
 0x79c   : > { %v1702_v26 = vmul.f32 %v1698_v13, %v1698_v13 }
 0x79d   : > { %v1701_v25 = vmul.f32 %v1697_v24, %v1697_v24 }
 0x79f   : > { %2427 = vmatprep.mubr.msk.f32.mxu0 %vm656_vm2, %v1701_v25 }
 0x7a0   : > { %2428 = vmatmul.mubr.msk.f32.gmra.mrb[22].mxu0 %vm656_vm2, %v1702_v26 }
 0x86b   : > { %v2426_v28 = vpop.f32.mrb[20].mxu0 }
 0x86c   : > { %v1801_v29 = vmul.f32 0.25, %v2426_v28  ;;  %v1781_v30 = vpop.f32.mrb[21].mxu0 }
 0x86d   : > { %v1800_v31 = vmul.f32 0.25, %v1781_v30  ;;  %v2262_v30 = vld [vmem:[%s3178_s13] ss:$0 sm:$0xff] }
 0x86e   : > { %v1805_v14 = vadd.f32 1e-05, %v1801_v29 }
 0x86f   : > { %v1804_v32 = vadd.f32 1e-05, %v1800_v31 }
 0x871   : > { %2596 = vrsqrt.f32 %v1804_v32 }
 0x872   : > { %2598 = vrsqrt.f32 %v1805_v14 }
 0x873   : > { %v2429_v36 = vpop.f32.mrb[22].mxu0 }
 0x874   : > { %v1803_v37 = vmul.f32 0.25, %v2429_v36  ;;  %v1791_v40 = vpop.f32.mrb[23].mxu0 }
 0x875   : > { %v1802_v42 = vmul.f32 0.25, %v1791_v40 }
 0x876   : > { %v1807_v38 = vadd.f32 1e-05, %v1803_v37 }
 0x877   : > { %v1806_v21 = vadd.f32 1e-05, %v1802_v42 }
 0x879   : > { %2600 = vrsqrt.f32 %v1806_v21 }
 0x87a   : > { %2602 = vrsqrt.f32 %v1807_v38 }
 0x87b   : > { %v2597_v34 = vpop.eup %2596 }
 0x87c   : > { %v2599_v43 = vpop.eup %2598  ;;  %2432 = vmatprep.mubr.msk.f32.mxu0 %vm758_vm3, %v2597_v34 }
 0x87d   : > { %2433 = vmatmul.mubr.msk.f32.vlgmr.msra.gmra.mrb[24].mxu0 %vm758_vm3, %v2599_v43 }
 0x87e   : > { %2439 = vmatpush3.msk.msra.mxu0 %vm567_vm0, %v1975_v27 }
 0x883   : > { %v2601_v45 = vpop.eup %2600 }
 0x884   : > { %v2603_v63 = vpop.eup %2602  ;;  %2435 = vmatprep.mubr.msk.f32.mxu0 %vm758_vm3, %v2601_v45 }
 0x885   : > { %2436 = vmatmul.mubr.msk.f32.gmra.mrb[26].mxu0 %vm758_vm3, %v2603_v63 }
 0x886   : > { %2440 = vmatprep.mubr.msk.f32.mxu0 %vm1983_vm5, %v1971_v33 }
 0x889   : > { %2441 = vmatmul.mubr.msk.f32.vlgmr.msra.gmra.mrb[28].mxu0 %vm1983_vm5, %v1972_v46 }
 0x88a   : > { %2443 = vmatprep.mubr.msk.f32.mxu0 %vm1983_vm5, %v1973_v47 }
 0x88d   : > { %2444 = vmatmul.mubr.msk.f32.gmra.mrb[30].mxu0 %vm1983_vm5, %v1974_v35 }
 0x950   : > { %v2434_v48 = vpop.f32.mrb[24].mxu0 }
 0x951   : > { %v1910_v44 = vmul.f32 %v2434_v48, %v1696_v17  ;;  %v1890_v50 = vpop.f32.mrb[25].mxu0 }
 0x952   : > { %v1909_v39 = vmul.f32 %v1890_v50, %v1695_v19 }
 0x953   : > { %v1921_v54 = vmul.f32 %v2260_v49, %v1910_v44 }
 0x954   : > { %v1920_v41 = vmul.f32 %v2260_v49, %v1909_v39 }
 0x955   : > { %v1932_v55 = vadd.f32 %v2261_v52, %v1921_v54 }
 0x956   : > { %v1931_v56 = vadd.f32 %v2261_v52, %v1920_v41 }
 0x957   : > { %v1936_v57 = vmin.f32 %v1932_v55, 20.0 }
 0x958   : > { %v1935_v58 = vmin.f32 %v1931_v56, 20.0  ;;  %v2437_v59 = vpop.f32.mrb[26].mxu0 }
 0x959   : > { %v1941_v60 = vmul.f32 1.442695, %v1936_v57  ;;  %v1912_v51 = vmul.f32 %v2437_v59, %v1698_v13  ;;  %v1900_v61 = vpop.f32.mrb[27].mxu0 }
 0x95a   : > { %v1939_v62 = vmul.f32 1.442695, %v1935_v58  ;;  %v1911_v0 = vmul.f32 %v1900_v61, %v1697_v24 }
 0x95b   : > { %2604 = vpow2.f32 %v1941_v60  ;;  %v1923_v53 = vmul.f32 %v2260_v49, %v1912_v51 }
 0x95c   : > { %2606 = vpow2.f32 %v1939_v62  ;;  %v1922_v1 = vmul.f32 %v2260_v49, %v1911_v0  ;;  %v2442_v2 = vpop.f32.mrb[28].mxu0 }
 0x95d   : > { %v1934_v3 = vadd.f32 %v2261_v52, %v1923_v53  ;;  %v2065_v4 = vpop.f32.mrb[29].mxu0  ;;  %v2071_v36 = vadd.f32 %v2442_v2, %v2262_v30 }
 0x95e   : > { %v1933_v5 = vadd.f32 %v2261_v52, %v1922_v1  ;;  %v2066_v40 = vadd.f32 %v2262_v30, %v2065_v4 }
 0x95f   : > { %v1938_v7 = vmin.f32 %v1934_v3, 20.0 }
 0x960   : > { %v1937_v8 = vmin.f32 %v1933_v5, 20.0  ;;  %v2445_v9 = vpop.f32.mrb[30].mxu0 }
 0x961   : > { %v1945_v10 = vmul.f32 1.442695, %v1938_v7  ;;  %v2075_v11 = vpop.f32.mrb[31].mxu0  ;;  %v2081_v63 = vadd.f32 %v2445_v9, %v2262_v30 }
 0x962   : > { %v1943_v12 = vmul.f32 1.442695, %v1937_v8  ;;  %v2076_v47 = vadd.f32 %v2262_v30, %v2075_v11 }
 0x963   : > { %2608 = vpow2.f32 %v1945_v10 }
 0x964   : > { %2610 = vpow2.f32 %v1943_v12 }
 0x965   : > { %v2605_v15 = vpop.eup %2604 }
 0x966   : > { %v2607_v16 = vpop.eup %2606  ;;  %v1948_v17 = vadd.f32 2.0, %v2605_v15 }
 0x967   : > { %v1947_v18 = vadd.f32 2.0, %v2607_v16 }
 0x968   : > { %v1952_v19 = vmul.f32 %v2605_v15, %v1948_v17 }
 0x969   : > { %v1951_v20 = vmul.f32 %v2607_v16, %v1947_v18 }
 0x96a   : > { %v1956_v6 = vadd.f32 2.0, %v1952_v19 }
 0x96b   : > { %v1955_v22 = vadd.f32 2.0, %v1951_v20 }
 0x96c   : > { %2612 = vrcp.f32 %v1956_v6 }
 0x96d   : > { %v2609_v13 = vpop.eup %2608  ;;  %2614 = vrcp.f32 %v1955_v22 }
 0x96e   : > { %v2611_v23 = vpop.eup %2610  ;;  %v1950_v24 = vadd.f32 2.0, %v2609_v13 }
 0x96f   : > { %v1949_v25 = vadd.f32 2.0, %v2611_v23 }
 0x970   : > { %v1954_v26 = vmul.f32 %v2609_v13, %v1950_v24 }
 0x971   : > { %v1953_v27 = vmul.f32 %v2611_v23, %v1949_v25 }
 0x972   : > { %v1958_v28 = vadd.f32 2.0, %v1954_v26 }
 0x973   : > { %v1957_v29 = vadd.f32 2.0, %v1953_v27 }
 0x974   : > { %2616 = vrcp.f32 %v1958_v28 }
 0x975   : > { %2618 = vrcp.f32 %v1957_v29 }
 0x976   : > { %v2613_v31 = vpop.eup %2612 }
 0x977   : > { %v2615_v14 = vpop.eup %2614  ;;  %v1962_v32 = vmul.f32 %v2613_v31, %v1952_v19 }
 0x978   : > { %v1960_v37 = vmul.f32 %v2615_v14, %v1951_v20 }
 0x979   : > { %v1968_v42 = vmul.f32 %v1962_v32, %v1932_v55 }
 0x97a   : > { %v1967_v38 = vmul.f32 %v1960_v37, %v1931_v56 }
 0x97b   : > { %v2085_v21 = vadd.f32 %v2071_v36, %v1968_v42 }
 0x97c   : > { %v2084_v34 = vadd.f32 %v2066_v40, %v1967_v38 }
 0x97d   : > { %2089 = vst.msk [vmem:[%s509_s26 + $0x8] sm:$0xff] %vm656_vm2, %v2085_v21 }
 0x97e   : > { %v2617_v43 = vpop.eup %2616  ;;  %2088 = vst.msk [vmem:[%s509_s26] sm:$0xff] %vm656_vm2, %v2084_v34 }
 0x97f   : > { %v2619_v45 = vpop.eup %2618  ;;  %v1966_v33 = vmul.f32 %v2617_v43, %v1954_v26 }
 0x980   : > { %v1964_v46 = vmul.f32 %v2619_v45, %v1953_v27 }
 0x981   : > { %v1970_v35 = vmul.f32 %v1966_v33, %v1934_v3 }
 0x982   : > { %v1969_v48 = vmul.f32 %v1964_v46, %v1933_v5 }
 0x983   : > { %v2087_v49 = vadd.f32 %v2081_v63, %v1970_v35 }
 0x984   : > { %v2086_v44 = vadd.f32 %v2076_v47, %v1969_v48 }
 0x985   : > { %2091 = vst.msk [vmem:[%s509_s26 + $0x18] sm:$0xff] %vm656_vm2, %v2087_v49 }
 0x986   : > { %2090 = vst.msk [vmem:[%s509_s26 + $0x10] sm:$0xff] %vm656_vm2, %v2086_v44 }
 0x987   : > { %2633 = shalt.err (!%p2630_p3)
}
 0x988   : > { %s2634_s15 = scalar_lea.hbm %s3116_s25, 512  ;;  %s2638_s18 = scalar_lea.hbm %s3179_s14, 1024 }
 0x989   : > { %p2635_p4 = scmp.ne.s32.totalorder %s3116_s25, %s2634_s15  ;;  %p2639_p9 = scmp.lt.u32.totalorder %s3116_s25, %s3179_s14 }
 0x98a   : > { %p2640_p10 = scmp.lt.u32.totalorder %s2638_s18, %s2634_s15  ;;  %p2642_p12 = scmp.lt.u32.totalorder %s2634_s15, %s3116_s25 }
 0x98b   : > { %p2636_p7 = pnand %p2635_p4, %p2804_p5 }
 0x98c   : > { %p2641_p11 = por %p2640_p10, %p2639_p9 }
 0x98d   : > { %p2637_p8 = pneg %p2636_p7 }
 0x98e   : > { %p2643_p13 = por %p2642_p12, %p2641_p11 }
 0x990   : > { %p2644_p0 = pnand %p2643_p13, %p2637_p8 }
 0x992   : > { %2647 = shalt.err (!%p2644_p0)
}
 0x993   : > { %s2689_s21 = smov 128   ;;  %s2690_s19 = smov 8  }
 0x994   : > { %2512 = dma.vmem_to_hbm [thread:$0]  (%p2804_p5), %s3118_s27, 512, %s3116_s25, %s3124_s17, %s2689_s21, %s2689_s21, %s2690_s19  }
 0x995 PF: > { %p2518_p1 = scmp.ge.s32.totalorder %s2682_s16, 2  ;;  %s2121_s26 = sand.u32 1, %s2670_s29  }
 0x996   : > { %s2122_s15 = scalar_lea.sflag [#allocation3], %s2121_s26 }
 0x997   : > { %p2515_p2 = pnand %p2518_p1, %p2808_p6 }
 0x999   : > { %2665 = dma.done.wait (!%p2515_p2), %s2122_s15, 512  }
 0x99a   : > { %2667 = vsyncadd (!%p2515_p2), %s2122_s15, 4294966784  ;;  %s3191_s16 = sld [smem:[#allocation6_spill]]  ;;  %s3192_s28 = sld [smem:[#allocation5_spill]] }
 0x99b   : > { %s3193_s15 = sld [smem:[#allocation7_spill]]  ;;  %s3194_s29 = smov %s2674_s30 }
 0x9a0   : > { %p24_p3 = scmp.ge.s32.totalorder %s3191_s16, 4   ;;  %s3195_s30 = smov %s3192_s28 }
 0x9a2   :  { %26 = sbr.rel (!%p24_p3) target bundleno = 3 (0x3), region = 120 }
 0x9a9   :  { %2127 = vsyncpa [#allocation3], 1 }
 0x9aa   :  { %2129 = vsyncpa [#allocation3 + $0x1], 1 }

</bundles_post_ra>
